<compile_context>
chip_gen: v6e
topology: v6e:2x2x1
jax: 0.10.0
libtpu: 0.0.40
codegen_flags: <defaults>
</compile_context>

<pallas_src>
import functools

import numpy as np
import jax
import jax.numpy as jnp
from jax import lax
from jax.experimental import pallas as pl
from jax.experimental.pallas import tpu as pltpu

_MiB = 1024 * 1024


def _centered_dft_matrix(N):
    """W[u, j] = (1/sqrt(N)) * exp(-2*pi*i*(u - N//2)*(j + (N+1)//2)/N).

    Dense-matrix form of fftshift(FFT(ifftshift(x))) with ortho normalization
    (the torch roll-based fftshift/ifftshift fold into the index offsets; the
    derivation holds for even and odd N).  Returns float64 (cos, -sin); the
    inverse transform is the complex conjugate of the same symmetric matrix.
    """
    u = np.arange(N, dtype=np.float64)[:, None]
    j = np.arange(N, dtype=np.float64)[None, :]
    theta = 2.0 * np.pi * (u - (N // 2)) * (j + ((N + 1) // 2)) / N
    return np.cos(theta) / np.sqrt(N), -np.sin(theta) / np.sqrt(N)


def _tpu_vmem_capacity():
    """Physical VMEM bytes of the local TPU; conservative 64 MiB fallback."""
    default = 64 * _MiB
    try:
        cap = getattr(pltpu.get_tpu_info(), "vmem_capacity_bytes", None)
        return int(cap) if cap else default
    except Exception:          # hardware-query fallback only; stays conservative
        return default


def _vmem_estimate(B, nx, ny, x_itemsize, mat_itemsize):
    """Rough per-step VMEM footprint (double-buffered I/O + consts + temps)."""
    plane = B * nx * ny
    io = 2 * (2 * plane * x_itemsize        # x (2 channels), double-buffered
              + 3 * plane * 4               # k0 (2 ch) + mask, f32
              + 4 * plane * 4)              # x_res + k_out (2 ch each), f32
    mats = 2 * 4 * (nx * nx + ny * ny) * mat_itemsize   # 8 constant matrices
    scratch = 2 * plane * 4                 # Z / P scratch slabs
    temps = 14 * plane * 4                  # K / R slabs + Gauss temporaries
    return io + mats + scratch + temps


def _pick_batch_images(n, nx, ny, x_itemsize, mat_itemsize, vmem_cap, max_b=8):
    """Largest divisor of n (<= max_b) that fits the VMEM budget.

    On small-VMEM parts (v7x: 64 MiB, 2 TensorCores) prefer an even number of
    grid steps so the 1-D "parallel" grid load-balances across both cores; on
    128-MiB single-TensorCore parts (v5e/v6e) a single big step is allowed.
    """
    small_vmem = vmem_cap < 100 * _MiB
    budget = min(int(vmem_cap * 0.70), 96 * _MiB)
    cands = [b for b in range(1, min(max_b, n) + 1)
             if n % b == 0
             and _vmem_estimate(b, nx, ny, x_itemsize, mat_itemsize) <= budget]
    if not cands:
        return 1
    if small_vmem:
        even = [b for b in cands if (n // b) >= 2 and (n // b) % 2 == 0]
        if even:
            cands = even
    return max(cands)


def _dc_kernel(x_ref, k0_ref, m_ref,
               wxr_ref, wxi_ref, wxs_ref, wxd_ref,
               wytr_ref, wyti_ref, wyts_ref, wytd_ref,
               xres_ref, kout_ref,
               zr_ref, zi_ref,
               *, B, nx, ny, compute_dtype, mxu_precision):
    f32 = jnp.float32
    cdt = compute_dtype

    def mm(a, b):
        return jnp.dot(a, b, precision=mxu_precision,
                       preferred_element_type=f32)

    def cast(a):
        # Single cast per operand slab (no duplicate per-dot casts).
        return a if a.dtype == cdt else a.astype(cdt)

    # Gauss/Karatsuba 3-mult complex GEMMs, f32 accumulation.
    #   conj=False: weights (wr + i*wi), wsd must be wr + wi
    #               real = t1 - t2, imag = t3 - t1 - t2
    #   conj=True : weights (wr - i*wi), wsd must be wr - wi
    #               real = t1 + t2, imag = t3 - t1 + t2   (no slab negations)
    def cgemm_left(wr, wi, wsd, ar, ai, conj):
        a_r, a_i, a_s = cast(ar), cast(ai), cast(ar + ai)
        t1, t2, t3 = mm(wr, a_r), mm(wi, a_i), mm(wsd, a_s)
        if conj:
            return t1 + t2, t3 - t1 + t2
        return t1 - t2, t3 - t1 - t2

    def cgemm_right(ar, ai, wr, wi, wsd, conj):
        a_r, a_i, a_s = cast(ar), cast(ai), cast(ar + ai)
        t1, t2, t3 = mm(a_r, wr), mm(a_i, wi), mm(a_s, wsd)
        if conj:
            return t1 + t2, t3 - t1 + t2
        return t1 - t2, t3 - t1 - t2

    Wxr, Wxi, Wxs, Wxd = wxr_ref[...], wxi_ref[...], wxs_ref[...], wxd_ref[...]
    WyTr, WyTi, WyTs, WyTd = (wytr_ref[...], wyti_ref[...],
                              wyts_ref[...], wytd_ref[...])

    # ---- forward centered 2-D DFT:  K = Wx @ X @ Wy^T ----------------------
    # Per-image left transform written directly into the (B*nx, ny) scratch
    # slab (no concatenation); one wide right matmul over the image batch.
    if B == 1:
        Zr, Zi = cgemm_left(Wxr, Wxi, Wxs, x_ref[0, 0], x_ref[0, 1], conj=False)
    else:
        for b in range(B):
            r, i = cgemm_left(Wxr, Wxi, Wxs, x_ref[b, 0], x_ref[b, 1],
                              conj=False)
            zr_ref[b * nx:(b + 1) * nx, :] = r
            zi_ref[b * nx:(b + 1) * nx, :] = i
        Zr, Zi = zr_ref[...], zi_ref[...]
    Kr, Ki = cgemm_right(Zr, Zi, WyTr, WyTi, WyTs, conj=False)

    # ---- DC blend (out = k + m*(k0 - k)) fused with inverse left transform -
    # Inverse is conj(Wx) @ O @ conj(Wy)^T; the conjugate is handled by the
    # sign-flipped Gauss combine + (Wr - Wi) matrices (no negations of O/R).
    if B == 1:
        m = m_ref[0]
        o_r = Kr + m * (k0_ref[0, 0] - Kr)
        o_i = Ki + m * (k0_ref[0, 1] - Ki)
        kout_ref[0, 0] = o_r
        kout_ref[0, 1] = o_i
        Pr, Pi = cgemm_left(Wxr, Wxi, Wxd, o_r, o_i, conj=True)
    else:
        for b in range(B):
            sl = slice(b * nx, (b + 1) * nx)
            kr, ki = Kr[sl, :], Ki[sl, :]
            m = m_ref[b]
            o_r = kr + m * (k0_ref[b, 0] - kr)
            o_i = ki + m * (k0_ref[b, 1] - ki)
            kout_ref[b, 0] = o_r
            kout_ref[b, 1] = o_i
            r, i = cgemm_left(Wxr, Wxi, Wxd, o_r, o_i, conj=True)
            zr_ref[sl, :] = r
            zi_ref[sl, :] = i
        Pr, Pi = zr_ref[...], zi_ref[...]

    # ---- inverse right transform (conjugate weights), one wide matmul ------
    Rr, Ri = cgemm_right(Pr, Pi, WyTr, WyTi, WyTd, conj=True)

    # ---- stores: channel-major blocks, lane dim stays ny (dense) -----------
    if B == 1:
        xres_ref[0, 0] = Rr
        xres_ref[0, 1] = Ri
    else:
        for b in range(B):
            sl = slice(b * nx, (b + 1) * nx)
            xres_ref[b, 0] = Rr[sl, :]
            xres_ref[b, 1] = Ri[sl, :]


def data_consistency_in_kspace_i(x, k0, mask, noise_lvl=None, *,
                                 compute_dtype=jnp.bfloat16,
                                 f32_precision=lax.Precision.HIGHEST,
                                 batch_images=None,
                                 channel_major_k0=False,
                                 return_channel_major_k=False):
    """Pallas-TPU forward pass of DataConsistencyInKspace_I.perform.

    x: (n, 2, nx, ny).  k0: (n, nx, ny, 2) (or (n, 2, nx, ny) if
    channel_major_k0=True, skipping one host transpose pass).
    mask: (n, nx, ny, 1) or (n, nx, ny).
    Returns (x_res (n, 2, nx, ny), out (n, nx, ny, 2)); pass
    return_channel_major_k=True to get out as (n, 2, nx, ny) and skip the
    post-kernel HBM transpose.

    compute_dtype=bfloat16: fast MXU-native path (~1e-2 rel. error from bf16
    matrices + Gauss 3-mult).  compute_dtype=float32 uses f32_precision
    (HIGHEST by default; prefer lax.Precision.HIGH on v5e, where HIGHEST is
    ~6x MXU work).
    """
    # TODO(synk): noise_lvl branch (weighted DC) not wired into the kernel.
    assert noise_lvl is None
    n, c, nx, ny = x.shape
    assert c == 2, f"x must be (n, 2, nx, ny), got {x.shape}"
    if channel_major_k0:
        assert k0.shape == (n, 2, nx, ny), f"bad k0 shape {k0.shape}"
    else:
        assert k0.shape == (n, nx, ny, 2), f"bad k0 shape {k0.shape}"
    if mask.ndim == 4:
        assert mask.shape == (n, nx, ny, 1), f"bad mask shape {mask.shape}"
        m = mask.reshape(n, nx, ny)
    else:
        assert mask.shape == (n, nx, ny), f"bad mask shape {mask.shape}"
        m = mask

    f32 = jnp.float32
    compute_dtype = jnp.dtype(compute_dtype)
    is_f32 = compute_dtype == jnp.dtype(jnp.float32)
    mat_dt = jnp.dtype(jnp.float32) if is_f32 else compute_dtype
    mxu_precision = f32_precision if is_f32 else None

    # x only feeds the MXU: ship it in the MXU operand dtype (halves its DMA
    # on the bf16 path).  k0/mask feed the exact f32 blend and stay f32.
    x_in = x.astype(mat_dt)
    # Single fused XLA transpose+convert pass (skipped when channel-major).
    k0_cm = (k0.astype(f32) if channel_major_k0
             else jnp.moveaxis(k0, -1, 1).astype(f32))
    m = m.astype(f32)

    vmem_cap = _tpu_vmem_capacity()
    x_isz = jnp.dtype(mat_dt).itemsize
    mat_isz = jnp.dtype(mat_dt).itemsize
    if batch_images is None:
        B = _pick_batch_images(n, nx, ny, x_isz, mat_isz, vmem_cap)
    else:
        B = int(batch_images)
    assert n % B == 0, f"batch_images={B} must divide n={n}"
    steps = n // B

    # Centered DFT matrices; the (Wr+Wi)/(Wr-Wi) sums drive the forward /
    # conjugate-inverse Gauss combines.  Built in f64, cast once.
    wxr, wxi = _centered_dft_matrix(nx)
    wyr, wyi = _centered_dft_matrix(ny)
    consts = [jnp.asarray(a, dtype=mat_dt) for a in
              (wxr, wxi, wxr + wxi, wxr - wxi,
               wyr.T, wyi.T, (wyr + wyi).T, (wyr - wyi).T)]

    kernel = functools.partial(_dc_kernel, B=B, nx=nx, ny=ny,
                               compute_dtype=mat_dt,
                               mxu_precision=mxu_precision)

    plane_spec = pl.BlockSpec((B, 2, nx, ny), lambda g: (g, 0, 0, 0))
    mask_spec = pl.BlockSpec((B, nx, ny), lambda g: (g, 0, 0))

    def const_spec(k):
        # Constant block index -> DMA'd once for the whole grid.
        return pl.BlockSpec((k, k), lambda g: (0, 0))

    need = _vmem_estimate(B, nx, ny, x_isz, mat_isz)
    cap = min(vmem_cap, 100 * _MiB if vmem_cap >= 100 * _MiB else 64 * _MiB)
    vmem_limit = int(min(max(int(need * 1.25), 32 * _MiB), cap))

    grid_spec = pltpu.PrefetchScalarGridSpec(
        num_scalar_prefetch=0,
        grid=(steps,),
        in_specs=[plane_spec, plane_spec, mask_spec,
                  const_spec(nx), const_spec(nx), const_spec(nx),
                  const_spec(nx),
                  const_spec(ny), const_spec(ny), const_spec(ny),
                  const_spec(ny)],
        out_specs=[plane_spec, plane_spec],
        scratch_shapes=[pltpu.VMEM((B * nx, ny), f32),
                        pltpu.VMEM((B * nx, ny), f32)],
    )

    x_res, k_cm = pl.pallas_call(
        kernel,
        out_shape=(jax.ShapeDtypeStruct((n, 2, nx, ny), f32),   # x_res
                   jax.ShapeDtypeStruct((n, 2, nx, ny), f32)),  # k-space out
        grid_spec=grid_spec,
        compiler_params=pltpu.CompilerParams(
            dimension_semantics=("parallel",),
            vmem_limit_bytes=vmem_limit),
    )(x_in, k0_cm, m, *consts)

    if return_channel_major_k:
        return x_res, k_cm
    # One HBM transpose pass to match the torch (n, nx, ny, 2) output layout.
    return x_res, jnp.moveaxis(k_cm, 1, -1)


def _reference(x, k0, mask):
    """Pure-JAX reference (matches torch centered fft2/ifft2, ortho norm)."""
    xc = x[:, 0].astype(jnp.complex64) + 1j * x[:, 1].astype(jnp.complex64)
    k = jnp.fft.fftshift(
        jnp.fft.fft2(jnp.fft.ifftshift(xc, axes=(-2, -1)), norm="ortho"),
        axes=(-2, -1))
    k0c = k0[..., 0] + 1j * k0[..., 1]
    m = mask[..., 0]
    out = (1.0 - m) * k + m * k0c
    xres = jnp.fft.fftshift(
        jnp.fft.ifft2(jnp.fft.ifftshift(out, axes=(-2, -1)), norm="ortho"),
        axes=(-2, -1))
    x_res = jnp.stack([jnp.real(xres), jnp.imag(xres)], axis=1)
    out_k = jnp.stack([jnp.real(out), jnp.imag(out)], axis=-1)
    return x_res, out_k


if __name__ == "__main__":
    key = jax.random.PRNGKey(0)
    n, nx, ny = 4, 16, 16
    k1, k2, k3 = jax.random.split(key, 3)

    x = jax.random.normal(k1, (n, 2, nx, ny), dtype=jnp.float32)
    k0 = jax.random.normal(k2, (n, nx, ny, 2), dtype=jnp.float32)
    mask = (jax.random.uniform(k3, (n, nx, ny, 1)) > 0.5).astype(jnp.float32)

    x_res_ref, out_k_ref = _reference(x, k0, mask)

    # Fast path: bf16 MXU operands / bf16 DFT matrices, f32 accumulation.
    x_res, out_k = data_consistency_in_kspace_i(x, k0, mask, noise_lvl=None)
    jax.block_until_ready((x_res, out_k))
    np.testing.assert_allclose(np.asarray(out_k), np.asarray(out_k_ref),
                               atol=1e-1, rtol=1e-1)
    np.testing.assert_allclose(np.asarray(x_res), np.asarray(x_res_ref),
                               atol=1e-1, rtol=1e-1)

    # Accurate path: f32 operands with explicit HIGHEST precision.
    x_res32, out_k32 = data_consistency_in_kspace_i(
        x, k0, mask, noise_lvl=None, compute_dtype=jnp.float32)
    jax.block_until_ready((x_res32, out_k32))
    np.testing.assert_allclose(np.asarray(out_k32), np.asarray(out_k_ref),
                               atol=2e-4, rtol=2e-4)
    np.testing.assert_allclose(np.asarray(x_res32), np.asarray(x_res_ref),
                               atol=2e-4, rtol=2e-4)

    print("KERNEL_OK")
</pallas_src>

<mosaic_0001>
module attributes {stable_mosaic.version = 11 : i64} {
  func.func @_dc_kernel(%arg0: i32, %arg1: memref<2x2x16x16xbf16, #tpu.memory_space<vmem>>, %arg2: memref<2x2x16x16xf32, #tpu.memory_space<vmem>>, %arg3: memref<2x16x16xf32, #tpu.memory_space<vmem>>, %arg4: memref<16x16xbf16, #tpu.memory_space<vmem>>, %arg5: memref<16x16xbf16, #tpu.memory_space<vmem>>, %arg6: memref<16x16xbf16, #tpu.memory_space<vmem>>, %arg7: memref<16x16xbf16, #tpu.memory_space<vmem>>, %arg8: memref<16x16xbf16, #tpu.memory_space<vmem>>, %arg9: memref<16x16xbf16, #tpu.memory_space<vmem>>, %arg10: memref<16x16xbf16, #tpu.memory_space<vmem>>, %arg11: memref<16x16xbf16, #tpu.memory_space<vmem>>, %arg12: memref<2x2x16x16xf32, #tpu.memory_space<vmem>>, %arg13: memref<2x2x16x16xf32, #tpu.memory_space<vmem>>, %arg14: memref<32x16xf32, #tpu.memory_space<vmem>>, %arg15: memref<32x16xf32, #tpu.memory_space<vmem>>) attributes {dimension_semantics = [#tpu.dimension_semantics<parallel>], iteration_bounds = array<i64: 2>, scalar_prefetch = 0 : i64, scratch_operands = 2 : i64, tpu.core_type = #tpu.core_type<tc>, window_params = [{transform_indices = @transform_0, window_bounds = array<i64: 2, 2, 16, 16>}, {transform_indices = @transform_1, window_bounds = array<i64: 2, 2, 16, 16>}, {transform_indices = @transform_2, window_bounds = array<i64: 2, 16, 16>}, {pipeline_mode = #tpu.pipeline_mode<synchronous>, transform_indices = @transform_3, window_bounds = array<i64: 16, 16>}, {pipeline_mode = #tpu.pipeline_mode<synchronous>, transform_indices = @transform_4, window_bounds = array<i64: 16, 16>}, {pipeline_mode = #tpu.pipeline_mode<synchronous>, transform_indices = @transform_5, window_bounds = array<i64: 16, 16>}, {pipeline_mode = #tpu.pipeline_mode<synchronous>, transform_indices = @transform_6, window_bounds = array<i64: 16, 16>}, {pipeline_mode = #tpu.pipeline_mode<synchronous>, transform_indices = @transform_7, window_bounds = array<i64: 16, 16>}, {pipeline_mode = #tpu.pipeline_mode<synchronous>, transform_indices = @transform_8, window_bounds = array<i64: 16, 16>}, {pipeline_mode = #tpu.pipeline_mode<synchronous>, transform_indices = @transform_9, window_bounds = array<i64: 16, 16>}, {pipeline_mode = #tpu.pipeline_mode<synchronous>, transform_indices = @transform_10, window_bounds = array<i64: 16, 16>}, {transform_indices = @transform_11, window_bounds = array<i64: 2, 2, 16, 16>}, {transform_indices = @transform_12, window_bounds = array<i64: 2, 2, 16, 16>}]} {
    %c0 = arith.constant 0 : index
    %c0_0 = arith.constant 0 : index
    %0 = vector.load %arg4[%c0, %c0_0] : memref<16x16xbf16, #tpu.memory_space<vmem>>, vector<16x16xbf16>
    %c0_1 = arith.constant 0 : index
    %c0_2 = arith.constant 0 : index
    %1 = vector.load %arg5[%c0_1, %c0_2] : memref<16x16xbf16, #tpu.memory_space<vmem>>, vector<16x16xbf16>
    %c0_3 = arith.constant 0 : index
    %c0_4 = arith.constant 0 : index
    %2 = vector.load %arg6[%c0_3, %c0_4] : memref<16x16xbf16, #tpu.memory_space<vmem>>, vector<16x16xbf16>
    %c0_5 = arith.constant 0 : index
    %c0_6 = arith.constant 0 : index
    %3 = vector.load %arg7[%c0_5, %c0_6] : memref<16x16xbf16, #tpu.memory_space<vmem>>, vector<16x16xbf16>
    %c0_7 = arith.constant 0 : index
    %c0_8 = arith.constant 0 : index
    %4 = vector.load %arg8[%c0_7, %c0_8] : memref<16x16xbf16, #tpu.memory_space<vmem>>, vector<16x16xbf16>
    %c0_9 = arith.constant 0 : index
    %c0_10 = arith.constant 0 : index
    %5 = vector.load %arg9[%c0_9, %c0_10] : memref<16x16xbf16, #tpu.memory_space<vmem>>, vector<16x16xbf16>
    %c0_11 = arith.constant 0 : index
    %c0_12 = arith.constant 0 : index
    %6 = vector.load %arg10[%c0_11, %c0_12] : memref<16x16xbf16, #tpu.memory_space<vmem>>, vector<16x16xbf16>
    %c0_13 = arith.constant 0 : index
    %c0_14 = arith.constant 0 : index
    %7 = vector.load %arg11[%c0_13, %c0_14] : memref<16x16xbf16, #tpu.memory_space<vmem>>, vector<16x16xbf16>
    %c0_15 = arith.constant 0 : index
    %c0_16 = arith.constant 0 : index
    %c0_17 = arith.constant 0 : index
    %c0_18 = arith.constant 0 : index
    %8 = vector.load %arg1[%c0_15, %c0_16, %c0_17, %c0_18] : memref<2x2x16x16xbf16, #tpu.memory_space<vmem>>, vector<1x1x16x16xbf16>
    %9 = vector.shape_cast %8 : vector<1x1x16x16xbf16> to vector<16x16xbf16>
    %c0_19 = arith.constant 0 : index
    %c1 = arith.constant 1 : index
    %c0_20 = arith.constant 0 : index
    %c0_21 = arith.constant 0 : index
    %10 = vector.load %arg1[%c0_19, %c1, %c0_20, %c0_21] : memref<2x2x16x16xbf16, #tpu.memory_space<vmem>>, vector<1x1x16x16xbf16>
    %11 = vector.shape_cast %10 : vector<1x1x16x16xbf16> to vector<16x16xbf16>
    %12 = arith.addf %9, %11 : vector<16x16xbf16>
    %cst = arith.constant dense<0.000000e+00> : vector<16x16xf32>
    %13 = tpu.matmul %0, %9, %cst {dimension_numbers = #tpu.dot_dimension_numbers<[1], [0], [0], [1], [0, 0, 1, 1], [], []>} : vector<16x16xbf16>, vector<16x16xbf16>, vector<16x16xf32> -> vector<16x16xf32>
    %cst_22 = arith.constant dense<0.000000e+00> : vector<16x16xf32>
    %14 = tpu.matmul %1, %11, %cst_22 {dimension_numbers = #tpu.dot_dimension_numbers<[1], [0], [0], [1], [0, 0, 1, 1], [], []>} : vector<16x16xbf16>, vector<16x16xbf16>, vector<16x16xf32> -> vector<16x16xf32>
    %cst_23 = arith.constant dense<0.000000e+00> : vector<16x16xf32>
    %15 = tpu.matmul %2, %12, %cst_23 {dimension_numbers = #tpu.dot_dimension_numbers<[1], [0], [0], [1], [0, 0, 1, 1], [], []>} : vector<16x16xbf16>, vector<16x16xbf16>, vector<16x16xf32> -> vector<16x16xf32>
    %16 = arith.subf %13, %14 : vector<16x16xf32>
    %17 = arith.subf %15, %13 : vector<16x16xf32>
    %18 = arith.subf %17, %14 : vector<16x16xf32>
    %c0_24 = arith.constant 0 : index
    %c0_25 = arith.constant 0 : index
    %19 = vector.load %arg14[%c0_24, %c0_25] : memref<32x16xf32, #tpu.memory_space<vmem>>, vector<16x16xf32>
    tpu.vector_store %arg14[%c0_24, %c0_25], %16 {strides = array<i32>} : memref<32x16xf32, #tpu.memory_space<vmem>>, vector<16x16xf32>,
    %c0_26 = arith.constant 0 : index
    %c0_27 = arith.constant 0 : index
    %20 = vector.load %arg15[%c0_26, %c0_27] : memref<32x16xf32, #tpu.memory_space<vmem>>, vector<16x16xf32>
    tpu.vector_store %arg15[%c0_26, %c0_27], %18 {strides = array<i32>} : memref<32x16xf32, #tpu.memory_space<vmem>>, vector<16x16xf32>,
    %c1_28 = arith.constant 1 : index
    %c0_29 = arith.constant 0 : index
    %c0_30 = arith.constant 0 : index
    %c0_31 = arith.constant 0 : index
    %21 = vector.load %arg1[%c1_28, %c0_29, %c0_30, %c0_31] : memref<2x2x16x16xbf16, #tpu.memory_space<vmem>>, vector<1x1x16x16xbf16>
    %22 = vector.shape_cast %21 : vector<1x1x16x16xbf16> to vector<16x16xbf16>
    %c1_32 = arith.constant 1 : index
    %c1_33 = arith.constant 1 : index
    %c0_34 = arith.constant 0 : index
    %c0_35 = arith.constant 0 : index
    %23 = vector.load %arg1[%c1_32, %c1_33, %c0_34, %c0_35] : memref<2x2x16x16xbf16, #tpu.memory_space<vmem>>, vector<1x1x16x16xbf16>
    %24 = vector.shape_cast %23 : vector<1x1x16x16xbf16> to vector<16x16xbf16>
    %25 = arith.addf %22, %24 : vector<16x16xbf16>
    %cst_36 = arith.constant dense<0.000000e+00> : vector<16x16xf32>
    %26 = tpu.matmul %0, %22, %cst_36 {dimension_numbers = #tpu.dot_dimension_numbers<[1], [0], [0], [1], [0, 0, 1, 1], [], []>} : vector<16x16xbf16>, vector<16x16xbf16>, vector<16x16xf32> -> vector<16x16xf32>
    %cst_37 = arith.constant dense<0.000000e+00> : vector<16x16xf32>
    %27 = tpu.matmul %1, %24, %cst_37 {dimension_numbers = #tpu.dot_dimension_numbers<[1], [0], [0], [1], [0, 0, 1, 1], [], []>} : vector<16x16xbf16>, vector<16x16xbf16>, vector<16x16xf32> -> vector<16x16xf32>
    %cst_38 = arith.constant dense<0.000000e+00> : vector<16x16xf32>
    %28 = tpu.matmul %2, %25, %cst_38 {dimension_numbers = #tpu.dot_dimension_numbers<[1], [0], [0], [1], [0, 0, 1, 1], [], []>} : vector<16x16xbf16>, vector<16x16xbf16>, vector<16x16xf32> -> vector<16x16xf32>
    %29 = arith.subf %26, %27 : vector<16x16xf32>
    %30 = arith.subf %28, %26 : vector<16x16xf32>
    %31 = arith.subf %30, %27 : vector<16x16xf32>
    %c16 = arith.constant 16 : index
    %c0_39 = arith.constant 0 : index
    %32 = vector.load %arg14[%c16, %c0_39] : memref<32x16xf32, #tpu.memory_space<vmem>>, vector<16x16xf32>
    tpu.vector_store %arg14[%c16, %c0_39], %29 {strides = array<i32>} : memref<32x16xf32, #tpu.memory_space<vmem>>, vector<16x16xf32>,
    %c16_40 = arith.constant 16 : index
    %c0_41 = arith.constant 0 : index
    %33 = vector.load %arg15[%c16_40, %c0_41] : memref<32x16xf32, #tpu.memory_space<vmem>>, vector<16x16xf32>
    tpu.vector_store %arg15[%c16_40, %c0_41], %31 {strides = array<i32>} : memref<32x16xf32, #tpu.memory_space<vmem>>, vector<16x16xf32>,
    %c0_42 = arith.constant 0 : index
    %c0_43 = arith.constant 0 : index
    %34 = vector.load %arg14[%c0_42, %c0_43] : memref<32x16xf32, #tpu.memory_space<vmem>>, vector<32x16xf32>
    %c0_44 = arith.constant 0 : index
    %c0_45 = arith.constant 0 : index
    %35 = vector.load %arg15[%c0_44, %c0_45] : memref<32x16xf32, #tpu.memory_space<vmem>>, vector<32x16xf32>
    %36 = arith.truncf %34 : vector<32x16xf32> to vector<32x16xbf16>
    %37 = arith.truncf %35 : vector<32x16xf32> to vector<32x16xbf16>
    %38 = arith.addf %34, %35 : vector<32x16xf32>
    %39 = arith.truncf %38 : vector<32x16xf32> to vector<32x16xbf16>
    %cst_46 = arith.constant dense<0.000000e+00> : vector<32x16xf32>
    %40 = tpu.matmul %36, %4, %cst_46 {dimension_numbers = #tpu.dot_dimension_numbers<[1], [0], [0], [1], [0, 0, 1, 1], [], []>} : vector<32x16xbf16>, vector<16x16xbf16>, vector<32x16xf32> -> vector<32x16xf32>
    %cst_47 = arith.constant dense<0.000000e+00> : vector<32x16xf32>
    %41 = tpu.matmul %37, %5, %cst_47 {dimension_numbers = #tpu.dot_dimension_numbers<[1], [0], [0], [1], [0, 0, 1, 1], [], []>} : vector<32x16xbf16>, vector<16x16xbf16>, vector<32x16xf32> -> vector<32x16xf32>
    %cst_48 = arith.constant dense<0.000000e+00> : vector<32x16xf32>
    %42 = tpu.matmul %39, %6, %cst_48 {dimension_numbers = #tpu.dot_dimension_numbers<[1], [0], [0], [1], [0, 0, 1, 1], [], []>} : vector<32x16xbf16>, vector<16x16xbf16>, vector<32x16xf32> -> vector<32x16xf32>
    %43 = arith.subf %40, %41 : vector<32x16xf32>
    %44 = arith.subf %42, %40 : vector<32x16xf32>
    %45 = arith.subf %44, %41 : vector<32x16xf32>
    %46 = vector.extract_strided_slice %43 {offsets = [0, 0], sizes = [16, 16], strides = [1, 1]} : vector<32x16xf32> to vector<16x16xf32>
    %47 = vector.extract_strided_slice %45 {offsets = [0, 0], sizes = [16, 16], strides = [1, 1]} : vector<32x16xf32> to vector<16x16xf32>
    %c0_49 = arith.constant 0 : index
    %c0_50 = arith.constant 0 : index
    %c0_51 = arith.constant 0 : index
    %48 = vector.load %arg3[%c0_49, %c0_50, %c0_51] : memref<2x16x16xf32, #tpu.memory_space<vmem>>, vector<1x16x16xf32>
    %49 = vector.shape_cast %48 : vector<1x16x16xf32> to vector<16x16xf32>
    %c0_52 = arith.constant 0 : index
    %c0_53 = arith.constant 0 : index
    %c0_54 = arith.constant 0 : index
    %c0_55 = arith.constant 0 : index
    %50 = vector.load %arg2[%c0_52, %c0_53, %c0_54, %c0_55] : memref<2x2x16x16xf32, #tpu.memory_space<vmem>>, vector<1x1x16x16xf32>
    %51 = vector.shape_cast %50 : vector<1x1x16x16xf32> to vector<16x16xf32>
    %52 = arith.subf %51, %46 : vector<16x16xf32>
    %53 = arith.mulf %49, %52 : vector<16x16xf32>
    %54 = arith.addf %46, %53 : vector<16x16xf32>
    %c0_56 = arith.constant 0 : index
    %c1_57 = arith.constant 1 : index
    %c0_58 = arith.constant 0 : index
    %c0_59 = arith.constant 0 : index
    %55 = vector.load %arg2[%c0_56, %c1_57, %c0_58, %c0_59] : memref<2x2x16x16xf32, #tpu.memory_space<vmem>>, vector<1x1x16x16xf32>
    %56 = vector.shape_cast %55 : vector<1x1x16x16xf32> to vector<16x16xf32>
    %57 = arith.subf %56, %47 : vector<16x16xf32>
    %58 = arith.mulf %49, %57 : vector<16x16xf32>
    %59 = arith.addf %47, %58 : vector<16x16xf32>
    %c0_60 = arith.constant 0 : index
    %c0_61 = arith.constant 0 : index
    %c0_62 = arith.constant 0 : index
    %c0_63 = arith.constant 0 : index
    %60 = vector.load %arg13[%c0_60, %c0_61, %c0_62, %c0_63] : memref<2x2x16x16xf32, #tpu.memory_space<vmem>>, vector<1x1x16x16xf32>
    %61 = vector.shape_cast %60 : vector<1x1x16x16xf32> to vector<16x16xf32>
    %62 = vector.shape_cast %54 : vector<16x16xf32> to vector<1x1x16x16xf32>
    tpu.vector_store %arg13[%c0_60, %c0_61, %c0_62, %c0_63], %62 {strides = array<i32>} : memref<2x2x16x16xf32, #tpu.memory_space<vmem>>, vector<1x1x16x16xf32>,
    %c0_64 = arith.constant 0 : index
    %c1_65 = arith.constant 1 : index
    %c0_66 = arith.constant 0 : index
    %c0_67 = arith.constant 0 : index
    %63 = vector.load %arg13[%c0_64, %c1_65, %c0_66, %c0_67] : memref<2x2x16x16xf32, #tpu.memory_space<vmem>>, vector<1x1x16x16xf32>
    %64 = vector.shape_cast %63 : vector<1x1x16x16xf32> to vector<16x16xf32>
    %65 = vector.shape_cast %59 : vector<16x16xf32> to vector<1x1x16x16xf32>
    tpu.vector_store %arg13[%c0_64, %c1_65, %c0_66, %c0_67], %65 {strides = array<i32>} : memref<2x2x16x16xf32, #tpu.memory_space<vmem>>, vector<1x1x16x16xf32>,
    %66 = arith.truncf %54 : vector<16x16xf32> to vector<16x16xbf16>
    %67 = arith.truncf %59 : vector<16x16xf32> to vector<16x16xbf16>
    %68 = arith.addf %54, %59 : vector<16x16xf32>
    %69 = arith.truncf %68 : vector<16x16xf32> to vector<16x16xbf16>
    %cst_68 = arith.constant dense<0.000000e+00> : vector<16x16xf32>
    %70 = tpu.matmul %0, %66, %cst_68 {dimension_numbers = #tpu.dot_dimension_numbers<[1], [0], [0], [1], [0, 0, 1, 1], [], []>} : vector<16x16xbf16>, vector<16x16xbf16>, vector<16x16xf32> -> vector<16x16xf32>
    %cst_69 = arith.constant dense<0.000000e+00> : vector<16x16xf32>
    %71 = tpu.matmul %1, %67, %cst_69 {dimension_numbers = #tpu.dot_dimension_numbers<[1], [0], [0], [1], [0, 0, 1, 1], [], []>} : vector<16x16xbf16>, vector<16x16xbf16>, vector<16x16xf32> -> vector<16x16xf32>
    %cst_70 = arith.constant dense<0.000000e+00> : vector<16x16xf32>
    %72 = tpu.matmul %3, %69, %cst_70 {dimension_numbers = #tpu.dot_dimension_numbers<[1], [0], [0], [1], [0, 0, 1, 1], [], []>} : vector<16x16xbf16>, vector<16x16xbf16>, vector<16x16xf32> -> vector<16x16xf32>
    %73 = arith.addf %70, %71 : vector<16x16xf32>
    %74 = arith.subf %72, %70 : vector<16x16xf32>
    %75 = arith.addf %74, %71 : vector<16x16xf32>
    %c0_71 = arith.constant 0 : index
    %c0_72 = arith.constant 0 : index
    %76 = vector.load %arg14[%c0_71, %c0_72] : memref<32x16xf32, #tpu.memory_space<vmem>>, vector<16x16xf32>
    tpu.vector_store %arg14[%c0_71, %c0_72], %73 {strides = array<i32>} : memref<32x16xf32, #tpu.memory_space<vmem>>, vector<16x16xf32>,
    %c0_73 = arith.constant 0 : index
    %c0_74 = arith.constant 0 : index
    %77 = vector.load %arg15[%c0_73, %c0_74] : memref<32x16xf32, #tpu.memory_space<vmem>>, vector<16x16xf32>
    tpu.vector_store %arg15[%c0_73, %c0_74], %75 {strides = array<i32>} : memref<32x16xf32, #tpu.memory_space<vmem>>, vector<16x16xf32>,
    %78 = vector.extract_strided_slice %43 {offsets = [16, 0], sizes = [16, 16], strides = [1, 1]} : vector<32x16xf32> to vector<16x16xf32>
    %79 = vector.extract_strided_slice %45 {offsets = [16, 0], sizes = [16, 16], strides = [1, 1]} : vector<32x16xf32> to vector<16x16xf32>
    %c1_75 = arith.constant 1 : index
    %c0_76 = arith.constant 0 : index
    %c0_77 = arith.constant 0 : index
    %80 = vector.load %arg3[%c1_75, %c0_76, %c0_77] : memref<2x16x16xf32, #tpu.memory_space<vmem>>, vector<1x16x16xf32>
    %81 = vector.shape_cast %80 : vector<1x16x16xf32> to vector<16x16xf32>
    %c1_78 = arith.constant 1 : index
    %c0_79 = arith.constant 0 : index
    %c0_80 = arith.constant 0 : index
    %c0_81 = arith.constant 0 : index
    %82 = vector.load %arg2[%c1_78, %c0_79, %c0_80, %c0_81] : memref<2x2x16x16xf32, #tpu.memory_space<vmem>>, vector<1x1x16x16xf32>
    %83 = vector.shape_cast %82 : vector<1x1x16x16xf32> to vector<16x16xf32>
    %84 = arith.subf %83, %78 : vector<16x16xf32>
    %85 = arith.mulf %81, %84 : vector<16x16xf32>
    %86 = arith.addf %78, %85 : vector<16x16xf32>
    %c1_82 = arith.constant 1 : index
    %c1_83 = arith.constant 1 : index
    %c0_84 = arith.constant 0 : index
    %c0_85 = arith.constant 0 : index
    %87 = vector.load %arg2[%c1_82, %c1_83, %c0_84, %c0_85] : memref<2x2x16x16xf32, #tpu.memory_space<vmem>>, vector<1x1x16x16xf32>
    %88 = vector.shape_cast %87 : vector<1x1x16x16xf32> to vector<16x16xf32>
    %89 = arith.subf %88, %79 : vector<16x16xf32>
    %90 = arith.mulf %81, %89 : vector<16x16xf32>
    %91 = arith.addf %79, %90 : vector<16x16xf32>
    %c1_86 = arith.constant 1 : index
    %c0_87 = arith.constant 0 : index
    %c0_88 = arith.constant 0 : index
    %c0_89 = arith.constant 0 : index
    %92 = vector.load %arg13[%c1_86, %c0_87, %c0_88, %c0_89] : memref<2x2x16x16xf32, #tpu.memory_space<vmem>>, vector<1x1x16x16xf32>
    %93 = vector.shape_cast %92 : vector<1x1x16x16xf32> to vector<16x16xf32>
    %94 = vector.shape_cast %86 : vector<16x16xf32> to vector<1x1x16x16xf32>
    tpu.vector_store %arg13[%c1_86, %c0_87, %c0_88, %c0_89], %94 {strides = array<i32>} : memref<2x2x16x16xf32, #tpu.memory_space<vmem>>, vector<1x1x16x16xf32>,
    %c1_90 = arith.constant 1 : index
    %c1_91 = arith.constant 1 : index
    %c0_92 = arith.constant 0 : index
    %c0_93 = arith.constant 0 : index
    %95 = vector.load %arg13[%c1_90, %c1_91, %c0_92, %c0_93] : memref<2x2x16x16xf32, #tpu.memory_space<vmem>>, vector<1x1x16x16xf32>
    %96 = vector.shape_cast %95 : vector<1x1x16x16xf32> to vector<16x16xf32>
    %97 = vector.shape_cast %91 : vector<16x16xf32> to vector<1x1x16x16xf32>
    tpu.vector_store %arg13[%c1_90, %c1_91, %c0_92, %c0_93], %97 {strides = array<i32>} : memref<2x2x16x16xf32, #tpu.memory_space<vmem>>, vector<1x1x16x16xf32>,
    %98 = arith.truncf %86 : vector<16x16xf32> to vector<16x16xbf16>
    %99 = arith.truncf %91 : vector<16x16xf32> to vector<16x16xbf16>
    %100 = arith.addf %86, %91 : vector<16x16xf32>
    %101 = arith.truncf %100 : vector<16x16xf32> to vector<16x16xbf16>
    %cst_94 = arith.constant dense<0.000000e+00> : vector<16x16xf32>
    %102 = tpu.matmul %0, %98, %cst_94 {dimension_numbers = #tpu.dot_dimension_numbers<[1], [0], [0], [1], [0, 0, 1, 1], [], []>} : vector<16x16xbf16>, vector<16x16xbf16>, vector<16x16xf32> -> vector<16x16xf32>
    %cst_95 = arith.constant dense<0.000000e+00> : vector<16x16xf32>
    %103 = tpu.matmul %1, %99, %cst_95 {dimension_numbers = #tpu.dot_dimension_numbers<[1], [0], [0], [1], [0, 0, 1, 1], [], []>} : vector<16x16xbf16>, vector<16x16xbf16>, vector<16x16xf32> -> vector<16x16xf32>
    %cst_96 = arith.constant dense<0.000000e+00> : vector<16x16xf32>
    %104 = tpu.matmul %3, %101, %cst_96 {dimension_numbers = #tpu.dot_dimension_numbers<[1], [0], [0], [1], [0, 0, 1, 1], [], []>} : vector<16x16xbf16>, vector<16x16xbf16>, vector<16x16xf32> -> vector<16x16xf32>
    %105 = arith.addf %102, %103 : vector<16x16xf32>
    %106 = arith.subf %104, %102 : vector<16x16xf32>
    %107 = arith.addf %106, %103 : vector<16x16xf32>
    %c16_97 = arith.constant 16 : index
    %c0_98 = arith.constant 0 : index
    %108 = vector.load %arg14[%c16_97, %c0_98] : memref<32x16xf32, #tpu.memory_space<vmem>>, vector<16x16xf32>
    tpu.vector_store %arg14[%c16_97, %c0_98], %105 {strides = array<i32>} : memref<32x16xf32, #tpu.memory_space<vmem>>, vector<16x16xf32>,
    %c16_99 = arith.constant 16 : index
    %c0_100 = arith.constant 0 : index
    %109 = vector.load %arg15[%c16_99, %c0_100] : memref<32x16xf32, #tpu.memory_space<vmem>>, vector<16x16xf32>
    tpu.vector_store %arg15[%c16_99, %c0_100], %107 {strides = array<i32>} : memref<32x16xf32, #tpu.memory_space<vmem>>, vector<16x16xf32>,
    %c0_101 = arith.constant 0 : index
    %c0_102 = arith.constant 0 : index
    %110 = vector.load %arg14[%c0_101, %c0_102] : memref<32x16xf32, #tpu.memory_space<vmem>>, vector<32x16xf32>
    %c0_103 = arith.constant 0 : index
    %c0_104 = arith.constant 0 : index
    %111 = vector.load %arg15[%c0_103, %c0_104] : memref<32x16xf32, #tpu.memory_space<vmem>>, vector<32x16xf32>
    %112 = arith.truncf %110 : vector<32x16xf32> to vector<32x16xbf16>
    %113 = arith.truncf %111 : vector<32x16xf32> to vector<32x16xbf16>
    %114 = arith.addf %110, %111 : vector<32x16xf32>
    %115 = arith.truncf %114 : vector<32x16xf32> to vector<32x16xbf16>
    %cst_105 = arith.constant dense<0.000000e+00> : vector<32x16xf32>
    %116 = tpu.matmul %112, %4, %cst_105 {dimension_numbers = #tpu.dot_dimension_numbers<[1], [0], [0], [1], [0, 0, 1, 1], [], []>} : vector<32x16xbf16>, vector<16x16xbf16>, vector<32x16xf32> -> vector<32x16xf32>
    %cst_106 = arith.constant dense<0.000000e+00> : vector<32x16xf32>
    %117 = tpu.matmul %113, %5, %cst_106 {dimension_numbers = #tpu.dot_dimension_numbers<[1], [0], [0], [1], [0, 0, 1, 1], [], []>} : vector<32x16xbf16>, vector<16x16xbf16>, vector<32x16xf32> -> vector<32x16xf32>
    %cst_107 = arith.constant dense<0.000000e+00> : vector<32x16xf32>
    %118 = tpu.matmul %115, %7, %cst_107 {dimension_numbers = #tpu.dot_dimension_numbers<[1], [0], [0], [1], [0, 0, 1, 1], [], []>} : vector<32x16xbf16>, vector<16x16xbf16>, vector<32x16xf32> -> vector<32x16xf32>
    %119 = arith.addf %116, %117 : vector<32x16xf32>
    %120 = arith.subf %118, %116 : vector<32x16xf32>
    %121 = arith.addf %120, %117 : vector<32x16xf32>
    %122 = vector.extract_strided_slice %119 {offsets = [0, 0], sizes = [16, 16], strides = [1, 1]} : vector<32x16xf32> to vector<16x16xf32>
    %c0_108 = arith.constant 0 : index
    %c0_109 = arith.constant 0 : index
    %c0_110 = arith.constant 0 : index
    %c0_111 = arith.constant 0 : index
    %123 = vector.load %arg12[%c0_108, %c0_109, %c0_110, %c0_111] : memref<2x2x16x16xf32, #tpu.memory_space<vmem>>, vector<1x1x16x16xf32>
    %124 = vector.shape_cast %123 : vector<1x1x16x16xf32> to vector<16x16xf32>
    %125 = vector.shape_cast %122 : vector<16x16xf32> to vector<1x1x16x16xf32>
    tpu.vector_store %arg12[%c0_108, %c0_109, %c0_110, %c0_111], %125 {strides = array<i32>} : memref<2x2x16x16xf32, #tpu.memory_space<vmem>>, vector<1x1x16x16xf32>,
    %126 = vector.extract_strided_slice %121 {offsets = [0, 0], sizes = [16, 16], strides = [1, 1]} : vector<32x16xf32> to vector<16x16xf32>
    %c0_112 = arith.constant 0 : index
    %c1_113 = arith.constant 1 : index
    %c0_114 = arith.constant 0 : index
    %c0_115 = arith.constant 0 : index
    %127 = vector.load %arg12[%c0_112, %c1_113, %c0_114, %c0_115] : memref<2x2x16x16xf32, #tpu.memory_space<vmem>>, vector<1x1x16x16xf32>
    %128 = vector.shape_cast %127 : vector<1x1x16x16xf32> to vector<16x16xf32>
    %129 = vector.shape_cast %126 : vector<16x16xf32> to vector<1x1x16x16xf32>
    tpu.vector_store %arg12[%c0_112, %c1_113, %c0_114, %c0_115], %129 {strides = array<i32>} : memref<2x2x16x16xf32, #tpu.memory_space<vmem>>, vector<1x1x16x16xf32>,
    %130 = vector.extract_strided_slice %119 {offsets = [16, 0], sizes = [16, 16], strides = [1, 1]} : vector<32x16xf32> to vector<16x16xf32>
    %c1_116 = arith.constant 1 : index
    %c0_117 = arith.constant 0 : index
    %c0_118 = arith.constant 0 : index
    %c0_119 = arith.constant 0 : index
    %131 = vector.load %arg12[%c1_116, %c0_117, %c0_118, %c0_119] : memref<2x2x16x16xf32, #tpu.memory_space<vmem>>, vector<1x1x16x16xf32>
    %132 = vector.shape_cast %131 : vector<1x1x16x16xf32> to vector<16x16xf32>
    %133 = vector.shape_cast %130 : vector<16x16xf32> to vector<1x1x16x16xf32>
    tpu.vector_store %arg12[%c1_116, %c0_117, %c0_118, %c0_119], %133 {strides = array<i32>} : memref<2x2x16x16xf32, #tpu.memory_space<vmem>>, vector<1x1x16x16xf32>,
    %134 = vector.extract_strided_slice %121 {offsets = [16, 0], sizes = [16, 16], strides = [1, 1]} : vector<32x16xf32> to vector<16x16xf32>
    %c1_120 = arith.constant 1 : index
    %c1_121 = arith.constant 1 : index
    %c0_122 = arith.constant 0 : index
    %c0_123 = arith.constant 0 : index
    %135 = vector.load %arg12[%c1_120, %c1_121, %c0_122, %c0_123] : memref<2x2x16x16xf32, #tpu.memory_space<vmem>>, vector<1x1x16x16xf32>
    %136 = vector.shape_cast %135 : vector<1x1x16x16xf32> to vector<16x16xf32>
    %137 = vector.shape_cast %134 : vector<16x16xf32> to vector<1x1x16x16xf32>
    tpu.vector_store %arg12[%c1_120, %c1_121, %c0_122, %c0_123], %137 {strides = array<i32>} : memref<2x2x16x16xf32, #tpu.memory_space<vmem>>, vector<1x1x16x16xf32>,
    return
  }
  func.func @transform_0(%arg0: i32) -> (i32, i32, i32, i32) {
    %c0_i32 = arith.constant 0 : i32
    %c0_i32_0 = arith.constant 0 : i32
    %c0_i32_1 = arith.constant 0 : i32
    %c0_i32_2 = arith.constant 0 : i32
    return %arg0, %c0_i32, %c0_i32_0, %c0_i32_1 : i32, i32, i32, i32
  }
  func.func @transform_1(%arg0: i32) -> (i32, i32, i32, i32) {
    %c0_i32 = arith.constant 0 : i32
    %c0_i32_0 = arith.constant 0 : i32
    %c0_i32_1 = arith.constant 0 : i32
    %c0_i32_2 = arith.constant 0 : i32
    return %arg0, %c0_i32, %c0_i32_0, %c0_i32_1 : i32, i32, i32, i32
  }
  func.func @transform_2(%arg0: i32) -> (i32, i32, i32) {
    %c0_i32 = arith.constant 0 : i32
    %c0_i32_0 = arith.constant 0 : i32
    %c0_i32_1 = arith.constant 0 : i32
    return %arg0, %c0_i32, %c0_i32_0 : i32, i32, i32
  }
  func.func @transform_3(%arg0: i32) -> (i32, i32) {
    %c0_i32 = arith.constant 0 : i32
    %c0_i32_0 = arith.constant 0 : i32
    %c0_i32_1 = arith.constant 0 : i32
    return %c0_i32, %c0_i32_0 : i32, i32
  }
  func.func @transform_4(%arg0: i32) -> (i32, i32) {
    %c0_i32 = arith.constant 0 : i32
    %c0_i32_0 = arith.constant 0 : i32
    %c0_i32_1 = arith.constant 0 : i32
    return %c0_i32, %c0_i32_0 : i32, i32
  }
  func.func @transform_5(%arg0: i32) -> (i32, i32) {
    %c0_i32 = arith.constant 0 : i32
    %c0_i32_0 = arith.constant 0 : i32
    %c0_i32_1 = arith.constant 0 : i32
    return %c0_i32, %c0_i32_0 : i32, i32
  }
  func.func @transform_6(%arg0: i32) -> (i32, i32) {
    %c0_i32 = arith.constant 0 : i32
    %c0_i32_0 = arith.constant 0 : i32
    %c0_i32_1 = arith.constant 0 : i32
    return %c0_i32, %c0_i32_0 : i32, i32
  }
  func.func @transform_7(%arg0: i32) -> (i32, i32) {
    %c0_i32 = arith.constant 0 : i32
    %c0_i32_0 = arith.constant 0 : i32
    %c0_i32_1 = arith.constant 0 : i32
    return %c0_i32, %c0_i32_0 : i32, i32
  }
  func.func @transform_8(%arg0: i32) -> (i32, i32) {
    %c0_i32 = arith.constant 0 : i32
    %c0_i32_0 = arith.constant 0 : i32
    %c0_i32_1 = arith.constant 0 : i32
    return %c0_i32, %c0_i32_0 : i32, i32
  }
  func.func @transform_9(%arg0: i32) -> (i32, i32) {
    %c0_i32 = arith.constant 0 : i32
    %c0_i32_0 = arith.constant 0 : i32
    %c0_i32_1 = arith.constant 0 : i32
    return %c0_i32, %c0_i32_0 : i32, i32
  }
  func.func @transform_10(%arg0: i32) -> (i32, i32) {
    %c0_i32 = arith.constant 0 : i32
    %c0_i32_0 = arith.constant 0 : i32
    %c0_i32_1 = arith.constant 0 : i32
    return %c0_i32, %c0_i32_0 : i32, i32
  }
  func.func @transform_11(%arg0: i32) -> (i32, i32, i32, i32) {
    %c0_i32 = arith.constant 0 : i32
    %c0_i32_0 = arith.constant 0 : i32
    %c0_i32_1 = arith.constant 0 : i32
    %c0_i32_2 = arith.constant 0 : i32
    return %arg0, %c0_i32, %c0_i32_0, %c0_i32_1 : i32, i32, i32, i32
  }
  func.func @transform_12(%arg0: i32) -> (i32, i32, i32, i32) {
    %c0_i32 = arith.constant 0 : i32
    %c0_i32_0 = arith.constant 0 : i32
    %c0_i32_1 = arith.constant 0 : i32
    %c0_i32_2 = arith.constant 0 : i32
    return %arg0, %c0_i32, %c0_i32_0, %c0_i32_1 : i32, i32, i32, i32
  }
}

</mosaic_0001>

<bundles_post_ra>
// kernel: tpu_custom_call.1
= control target key start
LH: loop header
LB: loop body
LE: loop exit
PB: predicated region body
PF: predicated region fallthrough
CT: control target
= control target key end

     0   :  { %s3375_s0 = inlined_call_operand.hbm [shape: bf16[4,2,16,16], index: 0, kind: input, shape index: {}]   ;;  %s3376_s1 = inlined_call_operand.hbm [shape: f32[4,2,16,16], index: 1, kind: input, shape index: {}]   ;;  %s3377_s2 = inlined_call_operand.hbm [shape: f32[4,16,16], index: 2, kind: input, shape index: {}]   ;;  %s3378_s3 = inlined_call_operand.hbm [shape: bf16[16,16], index: 3, kind: input, shape index: {}]   ;;  %s3379_s4 = inlined_call_operand.hbm [shape: bf16[16,16], index: 4, kind: input, shape index: {}]   ;;  %s3380_s5 = inlined_call_operand.vmem [shape: bf16[16,16], index: 5, kind: input, shape index: {}]   ;;  %s3381_s6 = inlined_call_operand.hbm [shape: bf16[16,16], index: 6, kind: input, shape index: {}]   ;;  %s3382_s7 = inlined_call_operand.hbm [shape: bf16[16,16], index: 7, kind: input, shape index: {}]   ;;  %s3383_s8 = inlined_call_operand.hbm [shape: bf16[16,16], index: 8, kind: input, shape index: {}]   ;;  %s3384_s9 = inlined_call_operand.vmem [shape: bf16[16,16], index: 9, kind: input, shape index: {}]   ;;  %s3385_s10 = inlined_call_operand.hbm [shape: bf16[16,16], index: 10, kind: input, shape index: {}]   ;;  %s3386_s11 = inlined_call_operand.hbm [shape: f32[4,2,16,16], index: 11, kind: output, shape index: {0}]   ;;  %s3387_s12 = inlined_call_operand.hbm [shape: f32[4,2,16,16], index: 12, kind: output, shape index: {1}]  }
   0x1   :  { %3410 = sst [smem:[#allocation34_spill]] %s3375_s0 }
   0x2   :  { %3411 = sst [smem:[#allocation35_spill]] %s3376_s1 }
   0x3   :  { %3412 = sst [smem:[#allocation36_spill]] %s3378_s3 }
   0x4   :  { %3413 = sst [smem:[#allocation37_spill]] %s3381_s6 }
   0x5   :  { %3414 = sst [smem:[#allocation38_spill]] %s3383_s8 }
   0x6   :  { %3415 = sst [smem:[#allocation39_spill]] %s3386_s11 }
   0x7   :  { %18 = vsyncpa [#allocation5], 0 }
   0x8   :  { %20 = vsyncpa [#allocation5 + $0x1], 0 }
   0x9   :  { %21 = vsyncpa [#allocation8], 0 }
   0xa   :  { %23 = vsyncpa [#allocation8 + $0x1], 0 }
   0xb   :  { %24 = vsyncpa [#allocation11], 0 }
   0xc   :  { %25 = vsyncpa [#allocation14], 0 }
   0xd   :  { %26 = vsyncpa [#allocation17], 0 }
   0xe   :  { %27 = vsyncpa [#allocation6], 0 }
   0xf   :  { %29 = vsyncpa [#allocation6 + $0x1], 0 }
  0x10   :  { %30 = vsyncpa [#allocation21], 0 }
  0x11   :  { %32 = vsyncpa [#allocation21 + $0x1], 0  ;;  %s2821_s21 = smov 0   ;;  %s2823_s22 = smov 0  }
  0x12   :  { %s2825_s23 = smov 0   ;;  %s2827_s24 = smov 0  }
  0x13 LB: > { %3416 = sst [smem:[#allocation29_spill]] %s2723_s21  ;;  %s2737_s25 = smov [#allocation10]   ;;  %s2735_s24 = sphi %s2827_s24, %s3456_s24   ;;  %s2731_s23 = sphi %s2825_s23, %s3458_s23   ;;  %s2727_s22 = sphi %s2823_s22, %s3460_s22   ;;  %s2723_s21 = sphi %s2821_s21, %s3459_s21  }
  0x14   : > { %3417 = sst [smem:[#allocation30_spill]] %s2731_s23  ;;  %s353_s26 = sshll.u32 %s2737_s25, 4  ;;  %s354_s26 = int_to_ptr.vmem [resolvable:$true] %s353_s26 }
  0x15   : > { %s2842_s27 = sadd.s32 4294967295, %s2735_s24   ;;  %p1977_p0 = scmp.ge.s32.totalorder %s2735_s24, 1 }
  0x16   : > { %p3398_p1 = scmp.eq.s32.totalorder %s2842_s27, 0  ;;  %p341_p2 = scmp.lt.s32.totalorder %s2735_s24, 3 }
  0x17   : > { %s2738_s29 = smov [#allocation13]   ;;  %s2739_s14 = smov [#allocation16]  }
  0x18   : > { %p2847_p3 = pnand %p1977_p0, %p341_p2  ;;  %s382_s30 = sshll.u32 %s2738_s29, 4  ;;  %s2860_s30 = int_to_ptr.vmem [resolvable:$true] %s382_s30 }
  0x19   : > { %s408_s15 = sshll.u32 %s2739_s14, 4  ;;  %s2396_s17 = scalar_lea.vmem %s354_s26, 128  ;;  %s2862_s15 = int_to_ptr.vmem [resolvable:$true] %s408_s15 }
  0x1a   : > { %s3418_s28 = scalar_select %p2847_p3, 1, 0 }
  0x1b   : > { %p2277_p5 = pneg %p2847_p3  ;;  %p2397_p8 = scmp.ne.s32.totalorder %s354_s26, %s2396_s17 }
  0x1c   : > { %p2404_p11 = scmp.lt.s32.totalorder %s354_s26, %s354_s26  ;;  %p2405_p12 = scmp.lt.s32.totalorder %s2396_s17, %s2396_s17 }
  0x1d   : > { %p2856_p6 = pnand %p2277_p5, %p3398_p1 }
  0x1e   : > { %p2406_p13 = por %p2405_p12, %p2404_p11 }
  0x1f   : > { %s3419_s13 = scalar_select %p2856_p6, 1, 0 }
  0x20   : > { %p2866_p7 = pneg %p2856_p6 }
  0x22   : > { %s3420_s16 = scalar_select %p2866_p7, 1, 0 }
  0x23   : > { %p2399_p9 = pnand %p2397_p8, %p2866_p7 }
  0x25   : > { %p2400_p10 = pneg %p2399_p9 }
  0x27   : > { %p2407_p0 = pnand %p2406_p13, %p2400_p10 }
  0x29   : > { %2410 = shalt.err (!%p2407_p0)
}
  0x2a   : > { %s3389_s18 = smov 64   ;;  %s3391_s19 = smov 4  }
  0x2b   : > { %s3421_s3 = sld [smem:[#allocation36_spill]]  ;;  %s2422_s29 = scalar_lea.vmem %s2860_s30, 128 }
  0x2c   : > { %p2423_p2 = scmp.ne.s32.totalorder %s2860_s30, %s2422_s29  ;;  %p2430_p9 = scmp.lt.s32.totalorder %s2860_s30, %s2860_s30 }
  0x2d   : > { %p2431_p10 = scmp.lt.s32.totalorder %s2422_s29, %s2422_s29 }
  0x2e   : > { %p2425_p5 = pnand %p2423_p2, %p2866_p7 }
  0x2f   : > { %p2432_p11 = por %p2431_p10, %p2430_p9 }
  0x30   : > { %p2426_p8 = pneg %p2425_p5 }
  0x31   : > { %2280 = dma.hbm_to_vmem [thread:$0]  (!%p2856_p6), %s3421_s3, 128, %s354_s26, [#allocation11], %s3389_s18, %s3389_s18, %s3391_s19  }
  0x32   : > { %p2433_p12 = pnand %p2432_p11, %p2426_p8 }
  0x34   : > { %2436 = shalt.err (!%p2433_p12)
}
  0x35   : > { %s3422_s6 = sld [smem:[#allocation37_spill]]  ;;  %s2448_s26 = scalar_lea.vmem %s2862_s15, 128 }
  0x36   : > { %p2449_p13 = scmp.ne.s32.totalorder %s2862_s15, %s2448_s26  ;;  %p2456_p5 = scmp.lt.s32.totalorder %s2862_s15, %s2862_s15 }
  0x37   : > { %p2457_p8 = scmp.lt.s32.totalorder %s2448_s26, %s2448_s26 }
  0x38   : > { %p2451_p0 = pnand %p2449_p13, %p2866_p7 }
  0x39   : > { %p2458_p9 = por %p2457_p8, %p2456_p5 }
  0x3a   : > { %p2452_p2 = pneg %p2451_p0 }
  0x3b   : > { %2286 = dma.hbm_to_vmem [thread:$0]  (!%p2856_p6), %s3422_s6, 128, %s2860_s30, [#allocation14], %s3389_s18, %s3389_s18, %s3391_s19  }
  0x3c   : > { %p2459_p10 = pnand %p2458_p9, %p2452_p2 }
  0x3e   : > { %2462 = shalt.err (!%p2459_p10)
}
  0x3f   : > { %s3423_s8 = sld [smem:[#allocation38_spill]]  ;;  %s1976_s30 = sadd.s32 4294967294, %s2735_s24  }
  0x40   : > { %s2912_s29 = sadd.s32 1, %s2735_s24   ;;  %s45_s14 = sadd.s32 1, %s2731_s23 }
  0x41   : > { %3424 = sst [smem:[#allocation31_spill]] %s2912_s29  ;;  %s42_s17 = ssub.s32 %s2735_s24, %s2912_s29 }
  0x42   : > { %p52_p11 = scmp.ne.s32.totalorder %s2731_s23, %s2727_s22  ;;  %p43_p12 = scmp.eq.s32.totalorder %s42_s17, 0 }
  0x43   : > { %p53_p13 = scmp.eq.s32.totalorder %s2735_s24, 0  ;;  %p58_p0 = scmp.ne.s32.totalorder %s2727_s22, %s2723_s21 }
  0x44   : > { %p302_p2 = scmp.eq.s32.totalorder %s2842_s27, 1  ;;  %p308_p10 = scmp.eq.s32.totalorder %s1976_s30, 1 }
  0x45   : > { %2292 = dma.hbm_to_vmem [thread:$0]  (!%p2856_p6), %s3423_s8, 128, %s2862_s15, [#allocation17], %s3389_s18, %s3389_s18, %s3391_s19  }
  0x46   : > { %s2924_s26 = scalar_select %p43_p12, %s2731_s23, %s45_s14  }
  0x47   : > { %p54_p5 = por %p53_p13, %p52_p11  ;;  %p2928_p8 = por %p3398_p1, %p58_p0 }
  0x48   : > { %3425 = sst [smem:[#allocation32_spill]] %s2924_s26  ;;  %p2932_p9 = por %p302_p2, %p52_p11 }
  0x49   : > { %s3426_s15 = scalar_select %p2928_p8, 1, 0 }
  0x4a   : > { %s3427_s20 = scalar_select %p2932_p9, 1, 0 }
  0x4b   : > { %p2319_p4 = scmp.lt.s32.totalorder %s2735_s24, 2  ;;  %s2938_s25 = sand.u32 1, %s2731_s23  }
  0x4c   : > { %p2940_p3 = por %p308_p10, %p58_p0  ;;  %s460_s14 = sand.u32 1, %s2735_s24  }
  0x4d   : > { %p2945_p12 = pnand %p2319_p4, %p54_p5  ;;  %s1989_s19 = sshll.u32 %s2938_s25, 6 }
  0x4e   : > { %s3428_s17 = scalar_select %p2940_p3, 1, 0 }
  0x4f   : > { %s2086_s3 = sshll.u32 %s2735_s24, 10  ;;  %s3431_s1 = sld [smem:[#allocation35_spill]] }
  0x50   : > { %3429 = sst [smem:[#allocation33_spill]] %s3428_s17  ;;  %s464_s26 = scalar_lea.vmem [#allocation7], %s1989_s19 }
  0x51   : > { %s472_s23 = sshll.u32 %s464_s26, 4  ;;  %s2958_s29 = scalar_lea.sflag [#allocation8], %s460_s14  ;;  %s2956_s23 = int_to_ptr.vmem [resolvable:$true] %s472_s23 }
  0x52   : > { %p2964_p11 = pneg %p2945_p12 }
  0x55   : > { %s2954_s30 = scalar_lea.hbm %s3431_s1, %s2086_s3  ;;  %s2468_s8 = scalar_lea.hbm %s3431_s1, 2048 }
  0x56   : > { %s2463_s17 = scalar_lea.hbm %s2954_s30, 1024  ;;  %p2469_p2 = scmp.lt.s32.totalorder %s2954_s30, %s3431_s1 }
  0x57   : > { %p2464_p4 = scmp.ne.s32.totalorder %s2954_s30, %s2463_s17  ;;  %p2470_p5 = scmp.lt.s32.totalorder %s2468_s8, %s2463_s17 }
  0x59   : > { %p2466_p13 = pnand %p2964_p11, %p2464_p4  ;;  %p2471_p10 = por %p2470_p5, %p2469_p2 }
  0x5b   : > { %p2467_p0 = pneg %p2466_p13 }
  0x5d   : > { %p2472_p1 = pnand %p2471_p10, %p2467_p0 }
  0x5f   : > { %2475 = shalt.err (!%p2472_p1)
}
  0x60   : > { %s2476_s14 = scalar_lea.vmem %s2956_s23, 1024  ;;  %s2742_s11 = smov [#allocation7]  }
  0x61   : > { %p2477_p3 = scmp.ne.s32.totalorder %s2956_s23, %s2476_s14  ;;  %s2481_s3 = sshll.u32 %s2742_s11, 4  ;;  %s2482_s3 = int_to_ptr.vmem [resolvable:$false] %s2481_s3 }
  0x62   : > { %s2483_s6 = scalar_lea.vmem %s2482_s3, 2048  ;;  %p2484_p9 = scmp.lt.s32.totalorder %s2956_s23, %s2482_s3 }
  0x63   : > { %p2479_p4 = pnand %p2477_p3, %p2964_p11  ;;  %p2485_p8 = scmp.lt.s32.totalorder %s2483_s6, %s2476_s14 }
  0x65   : > { %p2480_p13 = pneg %p2479_p4  ;;  %p2486_p6 = por %p2485_p8, %p2484_p9 }
  0x67   : > { %p2487_p7 = pnand %p2486_p6, %p2480_p13 }
  0x69   : > { %2490 = shalt.err (!%p2487_p7)
}
  0x6a   : > { %s3406_s17 = smov 128   ;;  %s3407_s8 = smov 8  }
  0x6b   : > { %2302 = dma.hbm_to_vmem [thread:$0]  (!%p2945_p12), %s2954_s30, 1024, %s2956_s23, %s2958_s29, %s3406_s17, %s3406_s17, %s3407_s8  }
  0x6c   : > { %s2745_s11 = smov [#allocation12]   ;;  %s2746_s26 = smov [#allocation15]  }
  0x6d   : > { %s366_s19 = sshll.u32 %s2745_s11, 4  ;;  %s395_s14 = sshll.u32 %s2746_s26, 4  ;;  %s367_s19 = int_to_ptr.vmem [resolvable:$true] %s366_s19  ;;  %s396_s14 = int_to_ptr.vmem [resolvable:$true] %s395_s14 }
  0x6e   : > { %s2502_s3 = scalar_lea.vmem %s367_s19, 128  ;;  %p3433_p3 = scmp.ne.s32.totalorder %s3420_s16, 0 }
  0x6f   : > { %p2503_p1 = scmp.ne.s32.totalorder %s367_s19, %s2502_s3  ;;  %p2510_p8 = scmp.lt.s32.totalorder %s367_s19, %s367_s19 }
  0x70   : > { %p2511_p9 = scmp.lt.s32.totalorder %s2502_s3, %s2502_s3 }
  0x71   : > { %p2505_p6 = pnand %p2503_p1, %p3433_p3 }
  0x72   : > { %p2512_p0 = por %p2511_p9, %p2510_p8 }
  0x73   : > { %p2506_p7 = pneg %p2505_p6 }
  0x75   : > { %p2513_p2 = pnand %p2512_p0, %p2506_p7 }
  0x77   : > { %2516 = shalt.err (!%p2513_p2)
}
  0x78   : > { %p3434_p5 = scmp.ne.s32.totalorder %s3419_s13, 0  ;;  %s3435_s6 = smov 4  }
  0x79   : > { %s3436_s1 = smov 64   ;;  %s2528_s11 = scalar_lea.vmem %s396_s14, 128 }
  0x7a   : > { %2283 = dma.hbm_to_vmem [thread:$0]  (!%p3434_p5), %s3379_s4, 128, %s367_s19, [#allocation11], %s3436_s1, %s3436_s1, %s3435_s6  }
  0x7b   : > { %p2529_p10 = scmp.ne.s32.totalorder %s396_s14, %s2528_s11  ;;  %p2536_p1 = scmp.lt.s32.totalorder %s396_s14, %s396_s14 }
  0x7c   : > { %p2537_p6 = scmp.lt.s32.totalorder %s2528_s11, %s2528_s11 }
  0x7d   : > { %p2531_p4 = pnand %p2529_p10, %p3433_p3 }
  0x7e   : > { %p2538_p7 = por %p2537_p6, %p2536_p1 }
  0x7f   : > { %p2532_p13 = pneg %p2531_p4 }
  0x81   : > { %p2539_p8 = pnand %p2538_p7, %p2532_p13 }
  0x83   : > { %2542 = shalt.err (!%p2539_p8)
}
  0x84   : > { %2289 = dma.hbm_to_vmem [thread:$0]  (!%p3434_p5), %s3382_s7, 128, %s396_s14, [#allocation14], %s3436_s1, %s3436_s1, %s3435_s6  }
  0x85   : > { %s2747_s19 = smov [#allocation18]   ;;  %s3409_s30 = sshll.u32 %s2938_s25, 5 }
  0x86   : > { %s424_s23 = sshll.u32 %s2747_s19, 4  ;;  %s425_s23 = int_to_ptr.vmem [resolvable:$true] %s424_s23 }
  0x87   : > { %s2554_s17 = scalar_lea.vmem %s425_s23, 128  ;;  %p2562_p10 = scmp.lt.s32.totalorder %s425_s23, %s425_s23 }
  0x88   : > { %p2555_p9 = scmp.ne.s32.totalorder %s425_s23, %s2554_s17  ;;  %p2563_p4 = scmp.lt.s32.totalorder %s2554_s17, %s2554_s17 }
  0x8a   : > { %p2557_p0 = pnand %p2555_p9, %p3433_p3  ;;  %p2564_p13 = por %p2563_p4, %p2562_p10 }
  0x8c   : > { %p2558_p2 = pneg %p2557_p0 }
  0x8e   : > { %p2565_p1 = pnand %p2564_p13, %p2558_p2 }
  0x90   : > { %2568 = shalt.err (!%p2565_p1)
}
  0x91   : > { %2295 = dma.hbm_to_vmem [thread:$0]  (!%p3434_p5), %s3385_s10, 128, %s425_s23, [#allocation17], %s3436_s1, %s3436_s1, %s3435_s6  }
  0x92   : > { %s3408_s16 = sshll.u32 %s2735_s24, 9  ;;  %s3437_s0 = sld [smem:[#allocation34_spill]] }
  0x93   : > { %s442_s13 = scalar_lea.vmem [#allocation4], %s3409_s30  ;;  %s439_s14 = scalar_lea.sflag [#allocation5], %s2938_s25 }
  0x94   : > { %s450_s19 = sshll.u32 %s442_s13, 4  ;;  %s3031_s19 = int_to_ptr.vmem [resolvable:$true] %s450_s19 }
  0x98   : > { %s3027_s3 = scalar_lea.hbm %s3437_s0, %s3408_s16  ;;  %s2574_s17 = scalar_lea.hbm %s3437_s0, 1024 }
  0x99   : > { %s2569_s11 = scalar_lea.hbm %s3027_s3, 512  ;;  %p2575_p7 = scmp.lt.s32.totalorder %s3027_s3, %s3437_s0 }
  0x9a   : > { %p2570_p3 = scmp.ne.s32.totalorder %s3027_s3, %s2569_s11  ;;  %p2576_p8 = scmp.lt.s32.totalorder %s2574_s17, %s2569_s11 }
  0x9c   : > { %p2572_p5 = pnand %p2570_p3, %p2964_p11  ;;  %p2577_p9 = por %p2576_p8, %p2575_p7 }
  0x9e   : > { %p2573_p6 = pneg %p2572_p5 }
  0xa0   : > { %p2578_p0 = pnand %p2577_p9, %p2573_p6 }
  0xa2   : > { %2581 = shalt.err (!%p2578_p0)
}
  0xa3   : > { %s2582_s13 = scalar_lea.vmem %s3031_s19, 512  ;;  %s2748_s30 = smov [#allocation4]  }
  0xa4   : > { %p2583_p2 = scmp.ne.s32.totalorder %s3031_s19, %s2582_s13  ;;  %s2587_s8 = sshll.u32 %s2748_s30, 4  ;;  %s2588_s8 = int_to_ptr.vmem [resolvable:$false] %s2587_s8 }
  0xa5   : > { %s2589_s23 = scalar_lea.vmem %s2588_s8, 1024  ;;  %p2590_p13 = scmp.lt.s32.totalorder %s3031_s19, %s2588_s8 }
  0xa6   : > { %p2585_p10 = pnand %p2583_p2, %p2964_p11  ;;  %p2591_p1 = scmp.lt.s32.totalorder %s2589_s23, %s2582_s13 }
  0xa8   : > { %p2586_p4 = pneg %p2585_p10  ;;  %p2592_p3 = por %p2591_p1, %p2590_p13 }
  0xaa   : > { %p2593_p5 = pnand %p2592_p3, %p2586_p4 }
  0xac   : > { %2596 = shalt.err (!%p2593_p5)
}
  0xad   : > { %2299 = dma.hbm_to_vmem [thread:$0]  (!%p2945_p12), %s3027_s3, 512, %s3031_s19, %s439_s14, %s3436_s1, %s3436_s1, %s3435_s6  }
  0xae   : > { %s3438_s16 = sshll.u32 %s2735_s24, 9  ;;  %s3439_s26 = sshll.u32 %s2938_s25, 5 }
  0xaf   : > { %s3062_s17 = scalar_lea.hbm %s3377_s2, %s3438_s16  ;;  %s486_s13 = scalar_lea.vmem [#allocation9], %s3439_s26 }
  0xb0   : > { %s494_s8 = sshll.u32 %s486_s13, 4  ;;  %s2597_s23 = scalar_lea.hbm %s3062_s17, 512  ;;  %s495_s8 = int_to_ptr.vmem [resolvable:$true] %s494_s8 }
  0xb1   : > { %p2598_p6 = scmp.ne.s32.totalorder %s3062_s17, %s2597_s23  ;;  %s2602_s6 = scalar_lea.hbm %s3377_s2, 1024 }
  0xb2   : > { %p2603_p9 = scmp.lt.s32.totalorder %s3062_s17, %s3377_s2  ;;  %p2604_p0 = scmp.lt.s32.totalorder %s2602_s6, %s2597_s23 }
  0xb3   : > { %p2600_p7 = pnand %p2598_p6, %p2964_p11 }
  0xb4   : > { %p2605_p2 = por %p2604_p0, %p2603_p9 }
  0xb5   : > { %p2601_p8 = pneg %p2600_p7 }
  0xb7   : > { %p2606_p10 = pnand %p2605_p2, %p2601_p8 }
  0xb9   : > { %2609 = shalt.err (!%p2606_p10)
}
  0xba   : > { %s2610_s25 = scalar_lea.vmem %s495_s8, 512  ;;  %s2749_s14 = smov [#allocation9]  }
  0xbb   : > { %p2611_p4 = scmp.ne.s32.totalorder %s495_s8, %s2610_s25  ;;  %s2615_s16 = sshll.u32 %s2749_s14, 4  ;;  %s2616_s16 = int_to_ptr.vmem [resolvable:$false] %s2615_s16 }
  0xbc   : > { %s2617_s30 = scalar_lea.vmem %s2616_s16, 1024  ;;  %p2618_p3 = scmp.lt.s32.totalorder %s495_s8, %s2616_s16 }
  0xbd   : > { %p2613_p13 = pnand %p2611_p4, %p2964_p11  ;;  %p2619_p5 = scmp.lt.s32.totalorder %s2617_s30, %s2610_s25 }
  0xbf   : > { %p2614_p1 = pneg %p2613_p13  ;;  %p2620_p6 = por %p2619_p5, %p2618_p3 }
  0xc1   : > { %p2621_p7 = pnand %p2620_p6, %p2614_p1 }
  0xc3   : > { %2624 = shalt.err (!%p2621_p7)
}
  0xc4   : > { %s3440_s0 = smov 8   ;;  %s3441_s11 = smov 128  }
  0xc5   : > { %2305 = dma.hbm_to_vmem [thread:$0]  (!%p2945_p12), %s3062_s17, 512, %s495_s8, %s2958_s29, %s3441_s11, %s3441_s11, %s3440_s0  }
  0xc6   : > { %p3442_p11 = scmp.ne.s32.totalorder %s3418_s28, 0 }
  0xc7   : > { %s3089_s21 = sand.u32 (!%p3442_p11), 1, %s2727_s22   ;;  %p3443_p8 = scmp.ne.s32.totalorder (!%p3442_p11), %s3426_s15, 0 }
  0xc8   : > { %506 = sbr.rel (%p3442_p11) target bundleno = 1117 (0x45d), region = 64  ;;  %s1998_s26 = sshll.u32 (!%p3442_p11), %s3089_s21, 5 }
  0xc9   : > { %s509_s13 = scalar_lea.sflag (!%p3442_p11), [#allocation5], %s3089_s21  ;;  %s3093_s23 = scalar_lea.vmem (!%p3442_p11), [#allocation4], %s1998_s26 }
  0xcd   : > { %2694 = dma.done.wait (%p3443_p8), %s509_s13, 512  }
  0xce   : > { %2696 = vsyncadd (%p3443_p8), %s509_s13, 4294966784  ;;  %s517_s28 = sand.u32 1, %s2842_s27   ;;  %s3101_s18 = sshll.u32 %s3089_s21, 6 }
  0xcf   : > { %s518_s29 = scalar_lea.sflag [#allocation8], %s517_s28  ;;  %s3104_s17 = scalar_lea.vmem [#allocation7], %s3101_s18 }
  0xd0   : > { %2698 = dma.done.wait (%p3443_p8), %s518_s29, 1536  }
  0xd1   : > { %2700 = vsyncadd (%p3443_p8), %s518_s29, 4294965760  ;;  %s3110_s8 = scalar_lea.vmem [#allocation9], %s1998_s26  ;;  %p3444_p12 = scmp.eq.s32.totalorder %s2842_s27, 0 }
  0xd3   : > { %2702 = dma.done.wait (%p3444_p12), [#allocation11], 256   ;;  %p3445_p9 = pmov %p3444_p12 }
  0xd5   : > { %2704 = vsyncadd (%p3445_p9), [#allocation11], 4294967040  ;;  %p3446_p0 = pmov %p3445_p9 }
  0xd7   : > { %2706 = dma.done.wait (%p3446_p0), [#allocation14], 256   ;;  %p3447_p2 = pmov %p3446_p0 }
  0xd8   : > { %p3448_p10 = pmov %p3446_p0 }
  0xd9   : > { %2708 = vsyncadd (%p3447_p2), [#allocation14], 4294967040 }
  0xda   : > { %2710 = dma.done.wait (%p3448_p10), [#allocation17], 256   ;;  %p3449_p4 = pmov %p3446_p0 }
  0xdb   : > { %v2750_v0 = vmov 0.0   ;;  %vm2751_vm0 = vmmov 0   ;;  %v632_v1 = vld [vmem:[%s3093_s23] sm:$0xf]  ;;  %v633_v2 = vld [vmem:[%s3093_s23 + $0x4] sm:$0xf] }
  0xdc   : > { %2712 = vsyncadd (%p3449_p4), [#allocation17], 4294967040  ;;  %2135 = vmatprep.subr.bf16.mxu0 %v2750_v0  ;;  %2141 = vmatprep.subr.bf16.mxu1 %v2750_v0  ;;  %v2009_v3 = vld [vmem:[%s3093_s23 + $0x8] sm:$0xf]  ;;  %v2012_v4 = vcombine.low %v632_v1, %v633_v2  ;;  %v2010_v5 = vld [vmem:[%s3093_s23 + $0xc] sm:$0xf] }
  0xdd   : > { %2137 = vmatprep.mubr.msk.bf16.mxu0 %vm2751_vm0, %v2750_v0  ;;  %2143 = vmatprep.mubr.msk.bf16.mxu1 %vm2751_vm0, %v2750_v0  ;;  %v637_v6 = vadd.bf16 %v2009_v3, %v632_v1  ;;  %v638_v7 = vadd.bf16 %v2010_v5, %v633_v2  ;;  %v2015_v8 = vcombine.low %v2009_v3, %v2010_v5  ;;  %v3134_v9 = vld [vmem:[#allocation10] sm:$0xff]   ;;  %vm650_vm1 = vcmask 130048   ;;  %v3136_v10 = vld [vmem:[#allocation12] sm:$0xff]   ;;  %v2020_v11 = vld [vmem:[%s3093_s23 + $0x10] sm:$0xf]  ;;  %s3214_s19 = scalar_lea.vmem [#allocation20], %s3101_s18 }
  0xde   : > { %2136 = vmatpush3.bf16.msra.mxu0 %v2012_v4  ;;  %v2021_v12 = vld [vmem:[%s3093_s23 + $0x14] sm:$0xf]  ;;  %v2022_v15 = vld [vmem:[%s3093_s23 + $0x18] sm:$0xf]  ;;  %v2023_v16 = vld [vmem:[%s3093_s23 + $0x1c] sm:$0xf] }
  0xdf   : > { %2142 = vmatpush3.bf16.msra.mxu1 %v2015_v8  ;;  %v2018_v13 = vcombine.low %v637_v6, %v638_v7  ;;  %2147 = vmatprep.subr.bf16.mxu0 %v2750_v0  ;;  %v2024_v14 = vcombine.low %v2020_v11, %v2021_v12  ;;  %v821_v17 = vadd.bf16 %v2022_v15, %v2020_v11  ;;  %v2378_v19 = vld [vmem:[%s3380_s5] sm:$0xff]   ;;  %v3167_v22 = vld [vmem:[#allocation15] sm:$0xff]   ;;  %s2090_s25 = sshll.u32 %s2842_s27, 10  ;;  %s1771_s0 = sshll.u32 %s3214_s19, 4  ;;  %s3287_s0 = int_to_ptr.vmem [resolvable:$true] %s1771_s0 }
  0xe0   : > { %2153 = vmatprep.subr.bf16.mxu1 %v2750_v0  ;;  %v822_v18 = vadd.bf16 %v2023_v16, %v2021_v12  ;;  %v2026_v20 = vcombine.low %v2022_v15, %v2023_v16  ;;  %v3169_v23 = vld [vmem:[#allocation16] sm:$0xff]   ;;  %s3284_s30 = scalar_lea.hbm %s3387_s12, %s2090_s25  ;;  %s1740_s11 = scalar_lea.sflag [#allocation21], %s3089_s21 }
  0xe1   : > { %2138 = vmatmul.mubr.msk.bf16.vlgmr.msra.gmra.mxu0 %vm650_vm1, %v3134_v9  ;;  %v3179_v24 = vld [vmem:[%s3384_s9] sm:$0xff]   ;;  %s2625_s26 = scalar_lea.vmem %s3287_s0, 1024  ;;  %p3450_p1 = scmp.ne.s32.totalorder %s3427_s20, 0 }
  0xe2   : > { %2144 = vmatmul.mubr.msk.bf16.vlgmr.msra.gmra.mxu1 %vm650_vm1, %v3136_v10  ;;  %2148 = vmatpush3.bf16.msra.mxu0 %v2018_v13  ;;  %v2028_v21 = vcombine.low %v821_v17, %v822_v18  ;;  %p2626_p13 = scmp.ne.s32.totalorder %s3287_s0, %s2625_s26  ;;  %s2752_s13 = smov [#allocation20]  }
  0xe3   : > { %2154 = vmatpush3.bf16.msra.mxu1 %v2024_v14  ;;  %2149 = vmatprep.mubr.msk.bf16.mxu0 %vm2751_vm0, %v2750_v0  ;;  %s2629_s23 = sshll.u32 %s2752_s13, 4  ;;  %s2630_s23 = int_to_ptr.vmem [resolvable:$false] %s2629_s23 }
  0xe4   : > { %2155 = vmatprep.mubr.msk.bf16.mxu1 %vm2751_vm0, %v2750_v0  ;;  %2159 = vmatprep.subr.bf16.mxu0 %v2750_v0  ;;  %p2627_p3 = pnand %p2626_p13, %p3450_p1  ;;  %s2631_s28 = scalar_lea.vmem %s2630_s23, 2048 }
  0xe5   : > { %2165 = vmatprep.subr.bf16.mxu1 %v2750_v0  ;;  %p2632_p6 = scmp.lt.s32.totalorder %s3287_s0, %s2630_s23  ;;  %p2633_p7 = scmp.lt.s32.totalorder %s2631_s28, %s2625_s26 }
  0xe6   : > { %p2628_p5 = pneg %p2627_p3 }
  0xe7   : > { %p2634_p11 = por %p2633_p7, %p2632_p6 }
  0xe9   : > { %2150 = vmatmul.mubr.msk.bf16.vlgmr.msra.gmra.mxu0 %vm650_vm1, %v2378_v19  ;;  %p2635_p8 = pnand %p2634_p11, %p2628_p5 }
  0xea   : > { %2156 = vmatmul.mubr.msk.bf16.vlgmr.msra.gmra.mxu1 %vm650_vm1, %v3134_v9  ;;  %2160 = vmatpush3.bf16.msra.mxu0 %v2026_v20 }
  0xeb   : > { %2166 = vmatpush3.bf16.msra.mxu1 %v2028_v21  ;;  %2161 = vmatprep.mubr.msk.bf16.mxu0 %vm2751_vm0, %v2750_v0  ;;  %v2049_v21 = vld [vmem:[%s3104_s17 + $0x20] sm:$0xff] }
  0xec   : > { %2167 = vmatprep.mubr.msk.bf16.mxu1 %vm2751_vm0, %v2750_v0  ;;  %2171 = vmatprep.subr.bf16.mxu0 %v3167_v22 }
  0xed   : > { %2177 = vmatprep.subr.bf16.mxu1 %v3169_v23 }
  0xf1   : > { %2162 = vmatmul.mubr.msk.bf16.vlgmr.msra.gmra.mxu0 %vm650_vm1, %v3136_v10 }
  0xf2   : > { %2168 = vmatmul.mubr.msk.bf16.vlgmr.msra.gmra.mxu1 %vm650_vm1, %v2378_v19  ;;  %2172 = vmatpush3.bf16.msra.mxu0 %v3167_v22 }
  0xf3   : > { %2178 = vmatpush3.bf16.msra.mxu1 %v3169_v23  ;;  %2183 = vmatprep.subr.bf16.mxu0 %v3179_v24 }
  0xf4   : > { %2189 = vmatprep.subr.bf16.mxu1 %v2750_v0 }
 0x1a1   : > { %v688_v25 = vpop.f32.mrf.mxu0 }
 0x1a2   : > { %v743_v26 = vpop.f32.mrf.mxu1 }
 0x1a3   : > { %v805_v27 = vsub.f32 %v688_v25, %v743_v26  ;;  %v2139_v28 = vpop.f32.mrf.mxu0 }
 0x1a4   : > { %v2145_v29 = vpop.f32.mrf.mxu1  ;;  %v1189_v28 = vld [vmem:[%s3104_s17] sm:$0xff] }
 0x1a5   : > { %811 = vst.msk [vmem:[#allocation2] sm:$0xff] %vm650_vm1, %v805_v27  ;;  %v691_v30 = vpop.f32.mrf.mxu0 }
 0x1a6   : > { %v746_v31 = vpop.f32.mrf.mxu1 }
 0x1a7   : > { %v806_v32 = vsub.f32 %v691_v30, %v746_v31  ;;  %v2140_v33 = vpop.f32.mrf.mxu0 }
 0x1a8   : > { %v2146_v34 = vpop.f32.mrf.mxu1 }
 0x1a9   : > { %812 = vst.msk [vmem:[#allocation2 + $0x8] sm:$0xff] %vm650_vm1, %v806_v32  ;;  %v798_v35 = vpop.f32.mrf.mxu0  ;;  %v1187_v32 = vld [vmem:[%s3110_s8] sm:$0xff]  ;;  %v2050_v34 = vld [vmem:[%s3104_s17 + $0x28] sm:$0xff] }
 0x1aa   : > { %v807_v36 = vsub.f32 %v798_v35, %v688_v25  ;;  %v863_v37 = vpop.f32.mrf.mxu1 }
 0x1ab   : > { %v2151_v38 = vpop.f32.mrf.mxu0 }
 0x1ac   : > { %v809_v39 = vsub.f32 %v807_v36, %v743_v26  ;;  %v2157_v40 = vpop.f32.mrf.mxu1  ;;  %v974_v47 = vld [vmem:[#allocation2] sm:$0xff]  ;;  %v2047_v26 = vld [vmem:[%s3110_s8 + $0x10] sm:$0xff] }
 0x1ad   : > { %v801_v41 = vpop.f32.mrf.mxu0 }
 0x1ae   : > { %813 = vst.msk [vmem:[#allocation3] sm:$0xff] %vm650_vm1, %v809_v39  ;;  %v808_v42 = vsub.f32 %v801_v41, %v691_v30  ;;  %v866_v43 = vpop.f32.mrf.mxu1  ;;  %v2048_v39 = vld [vmem:[%s3110_s8 + $0x18] sm:$0xff]  ;;  %v1190_v41 = vld [vmem:[%s3104_s17 + $0x8] sm:$0xff] }
 0x1af   : > { %v2152_v44 = vpop.f32.mrf.mxu0 }
 0x1b0   : > { %v810_v45 = vsub.f32 %v808_v42, %v746_v31  ;;  %v2158_v46 = vpop.f32.mrf.mxu1  ;;  %v975_v48 = vld [vmem:[#allocation2 + $0x8] sm:$0xff] }
 0x1b1   : > { %v910_v49 = vpop.f32.mrf.mxu0  ;;  %v982_v50 = vpack.c.bf16 %v975_v48, %v974_v47 }
 0x1b2   : > { %814 = vst.msk [vmem:[#allocation3 + $0x8] sm:$0xff] %vm650_vm1, %v810_v45  ;;  %v964_v51 = vsub.f32 %v863_v37, %v910_v49  ;;  %v957_v52 = vpop.f32.mrf.mxu1 }
 0x1b3   : > { %v966_v53 = vsub.f32 %v957_v52, %v863_v37  ;;  %2173 = vmatprep.mubr.msk.bf16.mxu0 %vm650_vm1, %v982_v50  ;;  %v2163_v54 = vpop.f32.mrf.mxu0 }
 0x1b4   : > { %970 = vst.msk [vmem:[#allocation2 + $0x10] sm:$0xff] %vm650_vm1, %v964_v51  ;;  %v2169_v55 = vpop.f32.mrf.mxu1 }
 0x1b5   : > { %v968_v56 = vsub.f32 %v966_v53, %v910_v49  ;;  %v913_v57 = vpop.f32.mrf.mxu0  ;;  %v978_v1 = vld [vmem:[#allocation3] sm:$0xff]  ;;  %v1188_v49 = vld [vmem:[%s3110_s8 + $0x8] sm:$0xff]  ;;  %v2039_v55 = vld [vmem:[%s3104_s17 + $0x10] sm:$0xff] }
 0x1b6   : > { %v965_v58 = vsub.f32 %v866_v43, %v913_v57  ;;  %v960_v59 = vpop.f32.mrf.mxu1  ;;  %v986_v7 = vadd.f32 %v978_v1, %v974_v47  ;;  %v2051_v47 = vld [vmem:[%s3104_s17 + $0x30] sm:$0xff] }
 0x1b7   : > { %972 = vst.msk [vmem:[#allocation3 + $0x10] sm:$0xff] %vm650_vm1, %v968_v56  ;;  %v967_v60 = vsub.f32 %v960_v59, %v866_v43  ;;  %v2164_v61 = vpop.f32.mrf.mxu0 }
 0x1b8   : > { %971 = vst.msk [vmem:[#allocation2 + $0x18] sm:$0xff] %vm650_vm1, %v965_v58  ;;  %v2170_v62 = vpop.f32.mrf.mxu1 }
 0x1b9   : > { %v969_v63 = vsub.f32 %v967_v60, %v913_v57  ;;  %v979_v2 = vld [vmem:[#allocation3 + $0x8] sm:$0xff]  ;;  %v2052_v62 = vld [vmem:[%s3104_s17 + $0x38] sm:$0xff] }
 0x1ba   : > { %v984_v3 = vpack.c.bf16 %v979_v2, %v978_v1  ;;  %v987_v4 = vadd.f32 %v979_v2, %v975_v48 }
 0x1bb   : > { %973 = vst.msk [vmem:[#allocation3 + $0x18] sm:$0xff] %vm650_vm1, %v969_v63  ;;  %v976_v5 = vld [vmem:[#allocation2 + $0x10] sm:$0xff] }
 0x1bc   : > { %2179 = vmatprep.mubr.msk.bf16.mxu1 %vm650_vm1, %v984_v3  ;;  %v990_v11 = vpack.c.bf16 %v987_v4, %v986_v7 }
 0x1be   : > { %v980_v12 = vld [vmem:[#allocation3 + $0x10] sm:$0xff] }
 0x1bf   : > { %v977_v6 = vld [vmem:[#allocation2 + $0x18] sm:$0xff]  ;;  %v988_v16 = vadd.f32 %v980_v12, %v976_v5 }
 0x1c0   : > { %v983_v8 = vpack.c.bf16 %v977_v6, %v976_v5 }
 0x1c2   : > { %2174 = vmatmul.mubr.msk.bf16.vlgmr.msra.gmra.mxu0 %vm650_vm1, %v983_v8  ;;  %v981_v13 = vld [vmem:[#allocation3 + $0x18] sm:$0xff] }
 0x1c3   : > { %2185 = vmatprep.mubr.msk.bf16.mxu0 %vm650_vm1, %v990_v11  ;;  %v985_v14 = vpack.c.bf16 %v981_v13, %v980_v12  ;;  %2184 = vmatpush3.bf16.msra.mxu0 %v3179_v24  ;;  %v989_v15 = vadd.f32 %v981_v13, %v977_v6  ;;  %v2040_v6 = vld [vmem:[%s3104_s17 + $0x18] sm:$0xff] }
 0x1c4   : > { %2195 = vmatprep.subr.bf16.mxu0 %v2750_v0 }
 0x1c5   : > { %2180 = vmatmul.mubr.msk.bf16.vlgmr.msra.gmra.mxu1 %vm650_vm1, %v985_v14  ;;  %v991_v17 = vpack.c.bf16 %v989_v15, %v988_v16 }
 0x1c6   : > { %2191 = vmatprep.mubr.msk.bf16.mxu1 %vm2751_vm0, %v2750_v0 }
 0x1ca   : > { %2186 = vmatmul.mubr.msk.bf16.vlgmr.msra.gmra.mxu0 %vm650_vm1, %v991_v17 }
 0x1cb   : > { %2197 = vmatprep.mubr.msk.bf16.mxu0 %vm2751_vm0, %v2750_v0 }
 0x282   : > { %v2175_v18 = vpop.f32.mrf.mxu0 }
 0x284   : > { %v1038_v19 = vpop.f32.mrf.mxu0 }
 0x285   : > { %v2181_v20 = vpop.f32.mrf.mxu1 }
 0x286   : > { %v1177_v24 = vsub.f32 %v2175_v18, %v2181_v20  ;;  %v2176_v25 = vpop.f32.mrf.mxu0 }
 0x287   : > { %v1099_v27 = vpop.f32.mrf.mxu1 }
 0x288   : > { %v1363_v29 = vsub.f32 %v2049_v21, %v1177_v24  ;;  %v1175_v30 = vsub.f32 %v1038_v19, %v1099_v27  ;;  %v1041_v31 = vpop.f32.mrf.mxu0 }
 0x289   : > { %v2182_v33 = vpop.f32.mrf.mxu1 }
 0x28a   : > { %v1365_v35 = vmul.f32 %v2047_v26, %v1363_v29  ;;  %v1191_v36 = vsub.f32 %v1189_v28, %v1175_v30  ;;  %v1178_v37 = vsub.f32 %v2176_v25, %v2182_v33  ;;  %v2187_v38 = vpop.f32.mrf.mxu0 }
 0x28b   : > { %v1102_v40 = vpop.f32.mrf.mxu1  ;;  %v1181_v42 = vsub.f32 %v2187_v38, %v2175_v18 }
 0x28c   : > { %v3209_v43 = vadd.f32 %v1365_v35, %v1177_v24  ;;  %v1193_v44 = vmul.f32 %v1191_v36, %v1187_v32  ;;  %v1364_v45 = vsub.f32 %v2050_v34, %v1178_v37  ;;  %v1176_v46 = vsub.f32 %v1041_v31, %v1102_v40  ;;  %v1160_v48 = vpop.f32.mrf.mxu0 }
 0x28d   : > { %v1185_v50 = vsub.f32 %v1181_v42, %v2181_v20  ;;  %v1179_v51 = vsub.f32 %v1160_v48, %v1038_v19 }
 0x28e   : > { %2053 = vst.msk [vmem:[%s3214_s19 + $0x20] sm:$0xff] %vm650_vm1, %v3209_v43  ;;  %v1195_v52 = vadd.f32 %v1193_v44, %v1175_v30  ;;  %v1366_v53 = vmul.f32 %v2048_v39, %v1364_v45  ;;  %v1192_v54 = vsub.f32 %v1190_v41, %v1176_v46  ;;  %v2188_v56 = vpop.f32.mrf.mxu0 }
 0x28f   : > { %v1372_v57 = vsub.f32 %v2051_v47, %v1185_v50  ;;  %v1183_v58 = vsub.f32 %v1179_v51, %v1099_v27  ;;  %v1182_v59 = vsub.f32 %v2188_v56, %v2176_v25 }
 0x290   : > { %1206 = vst.msk [vmem:[%s3214_s19] sm:$0xff] %vm650_vm1, %v1195_v52  ;;  %v1368_v60 = vadd.f32 %v1366_v53, %v1178_v37  ;;  %v1194_v61 = vmul.f32 %v1192_v54, %v1188_v49  ;;  %v1163_v63 = vpop.f32.mrf.mxu0 }
 0x291   : > { %v1374_v1 = vmul.f32 %v2047_v26, %v1372_v57  ;;  %v1200_v2 = vsub.f32 %v2039_v55, %v1183_v58  ;;  %v1186_v3 = vsub.f32 %v1182_v59, %v2182_v33  ;;  %v1180_v4 = vsub.f32 %v1163_v63, %v1041_v31  ;;  %v2383_v26 = vld [vmem:[#allocation13] sm:$0xff]  }
 0x292   : > { %2054 = vst.msk [vmem:[%s3214_s19 + $0x28] sm:$0xff] %vm650_vm1, %v1368_v60  ;;  %v1196_v5 = vadd.f32 %v1194_v61, %v1176_v46  ;;  %v1384_v27 = vpack.c.bf16 %v1368_v60, %v3209_v43 }
 0x293   : > { %v1376_v7 = vadd.f32 %v1374_v1, %v1185_v50  ;;  %v1202_v8 = vmul.f32 %v1200_v2, %v1187_v32  ;;  %v1373_v11 = vsub.f32 %v2052_v62, %v1186_v3  ;;  %v1184_v12 = vsub.f32 %v1180_v4, %v1102_v40  ;;  %v2384_v32 = vld [vmem:[#allocation18] sm:$0xff]  }
 0x294   : > { %1207 = vst.msk [vmem:[%s3214_s19 + $0x8] sm:$0xff] %vm650_vm1, %v1196_v5  ;;  %v1211_v13 = vpack.c.bf16 %v1196_v5, %v1195_v52 }
 0x295   : > { %2055 = vst.msk [vmem:[%s3214_s19 + $0x30] sm:$0xff] %vm650_vm1, %v1376_v7  ;;  %v1204_v14 = vadd.f32 %v1202_v8, %v1183_v58  ;;  %v1375_v15 = vmul.f32 %v2048_v39, %v1373_v11  ;;  %v1201_v16 = vsub.f32 %v2040_v6, %v1184_v12  ;;  %v1386_v30 = vadd.f32 %v1376_v7, %v3209_v43 }
 0x296   : > { %2190 = vmatpush3.bf16.msra.mxu1 %v1211_v13 }
 0x297   : > { %2041 = vst.msk [vmem:[%s3214_s19 + $0x10] sm:$0xff] %vm650_vm1, %v1204_v14  ;;  %v1377_v17 = vadd.f32 %v1375_v15, %v1186_v3  ;;  %v1203_v18 = vmul.f32 %v1201_v16, %v1188_v49  ;;  %2201 = vmatprep.subr.bf16.mxu1 %v2750_v0  ;;  %v1213_v20 = vadd.f32 %v1204_v14, %v1195_v52 }
 0x299   : > { %2056 = vst.msk [vmem:[%s3214_s19 + $0x38] sm:$0xff] %vm650_vm1, %v1377_v17  ;;  %v1205_v19 = vadd.f32 %v1203_v18, %v1184_v12  ;;  %2192 = vmatmul.mubr.msk.bf16.vlgmr.msra.gmra.mxu1 %vm650_vm1, %v3134_v9  ;;  %v1385_v28 = vpack.c.bf16 %v1377_v17, %v1376_v7  ;;  %v1387_v29 = vadd.f32 %v1377_v17, %v1368_v60 }
 0x29a   : > { %2203 = vmatprep.mubr.msk.bf16.mxu1 %vm2751_vm0, %v2750_v0 }
 0x29b   : > { %2042 = vst.msk [vmem:[%s3214_s19 + $0x18] sm:$0xff] %vm650_vm1, %v1205_v19  ;;  %v1214_v21 = vadd.f32 %v1205_v19, %v1196_v5  ;;  %v1212_v24 = vpack.c.bf16 %v1205_v19, %v1204_v14  ;;  %v1388_v31 = vpack.c.bf16 %v1387_v29, %v1386_v30 }
 0x29d   : > { %2196 = vmatpush3.bf16.msra.mxu0 %v1212_v24  ;;  %v1215_v25 = vpack.c.bf16 %v1214_v21, %v1213_v20 }
 0x29e   : > { %2207 = vmatprep.subr.bf16.mxu0 %v2750_v0 }
 0x29f   : > { %2202 = vmatpush3.bf16.msra.mxu1 %v1215_v25 }
 0x2a0   : > { %2198 = vmatmul.mubr.msk.bf16.vlgmr.msra.gmra.mxu0 %vm650_vm1, %v3136_v10  ;;  %2213 = vmatprep.subr.bf16.mxu1 %v2750_v0 }
 0x2a1   : > { %2208 = vmatpush3.bf16.msra.mxu0 %v1384_v27  ;;  %2209 = vmatprep.mubr.msk.bf16.mxu0 %vm2751_vm0, %v2750_v0 }
 0x2a2   : > { %2204 = vmatmul.mubr.msk.bf16.vlgmr.msra.gmra.mxu1 %vm650_vm1, %v2383_v26  ;;  %2219 = vmatprep.subr.bf16.mxu0 %v2750_v0 }
 0x2a3   : > { %2214 = vmatpush3.bf16.msra.mxu1 %v1385_v28  ;;  %2215 = vmatprep.mubr.msk.bf16.mxu1 %vm2751_vm0, %v2750_v0 }
 0x2a4   : > { %2225 = vmatprep.subr.bf16.mxu1 %v3167_v22 }
 0x2a8   : > { %2210 = vmatmul.mubr.msk.bf16.vlgmr.msra.gmra.mxu0 %vm650_vm1, %v3134_v9 }
 0x2a9   : > { %2220 = vmatpush3.bf16.msra.mxu0 %v1388_v31  ;;  %2221 = vmatprep.mubr.msk.bf16.mxu0 %vm2751_vm0, %v2750_v0 }
 0x2aa   : > { %2216 = vmatmul.mubr.msk.bf16.vlgmr.msra.gmra.mxu1 %vm650_vm1, %v3136_v10  ;;  %2231 = vmatprep.subr.bf16.mxu0 %v3169_v23 }
 0x2ab   : > { %2226 = vmatpush3.bf16.msra.mxu1 %v3167_v22 }
 0x2ac   : > { %2237 = vmatprep.subr.bf16.mxu1 %v2384_v32 }
 0x2b0   : > { %2222 = vmatmul.mubr.msk.bf16.vlgmr.msra.gmra.mxu0 %vm650_vm1, %v2383_v26 }
 0x2b1   : > { %2232 = vmatpush3.bf16.msra.mxu0 %v3169_v23 }
 0x359   : > { %v1250_v33 = vpop.f32.mrf.mxu1 }
 0x35b   : > { %v2193_v34 = vpop.f32.mrf.mxu1 }
 0x35d   : > { %v1253_v9 = vpop.f32.mrf.mxu1 }
 0x35f   : > { %v2194_v35 = vpop.f32.mrf.mxu1 }
 0x360   : > { %v1291_v36 = vpop.f32.mrf.mxu0 }
 0x361   : > { %v1347_v37 = vadd.f32 %v1291_v36, %v1250_v33 }
 0x362   : > { %v2199_v0 = vpop.f32.mrf.mxu0  ;;  %v1340_v38 = vpop.f32.mrf.mxu1 }
 0x363   : > { %1353 = vst.msk [vmem:[#allocation2] sm:$0xff] %vm650_vm1, %v1347_v37  ;;  %v1349_v10 = vsub.f32 %v1340_v38, %v1250_v33 }
 0x364   : > { %v1294_v39 = vpop.f32.mrf.mxu0  ;;  %v2205_v40 = vpop.f32.mrf.mxu1 }
 0x365   : > { %v1351_v22 = vadd.f32 %v1349_v10, %v1291_v36  ;;  %v1348_v41 = vadd.f32 %v1294_v39, %v1253_v9 }
 0x366   : > { %v2200_v42 = vpop.f32.mrf.mxu0  ;;  %v1343_v43 = vpop.f32.mrf.mxu1 }
 0x367   : > { %1355 = vst.msk [vmem:[#allocation3] sm:$0xff] %vm650_vm1, %v1351_v22  ;;  %1354 = vst.msk [vmem:[#allocation2 + $0x8] sm:$0xff] %vm650_vm1, %v1348_v41  ;;  %v1350_v23 = vsub.f32 %v1343_v43, %v1253_v9 }
 0x368   : > { %v2206_v44 = vpop.f32.mrf.mxu1  ;;  %v1423_v45 = vpop.f32.mrf.mxu0 }
 0x369   : > { %v1352_v46 = vadd.f32 %v1350_v23, %v1294_v39 }
 0x36a   : > { %v2211_v47 = vpop.f32.mrf.mxu0  ;;  %v1464_v48 = vpop.f32.mrf.mxu1  ;;  %v1522_v54 = vld [vmem:[#allocation2] sm:$0xff] }
 0x36b   : > { %1356 = vst.msk [vmem:[#allocation3 + $0x8] sm:$0xff] %vm650_vm1, %v1352_v46  ;;  %v1512_v49 = vadd.f32 %v1464_v48, %v1423_v45 }
 0x36c   : > { %v1426_v50 = vpop.f32.mrf.mxu0  ;;  %v2217_v51 = vpop.f32.mrf.mxu1 }
 0x36d   : > { %1518 = vst.msk [vmem:[#allocation2 + $0x10] sm:$0xff] %vm650_vm1, %v1512_v49 }
 0x36e   : > { %v2212_v52 = vpop.f32.mrf.mxu0  ;;  %v1467_v53 = vpop.f32.mrf.mxu1  ;;  %v1523_v55 = vld [vmem:[#allocation2 + $0x8] sm:$0xff]  ;;  %v1526_v62 = vld [vmem:[#allocation3] sm:$0xff] }
 0x36f   : > { %v1513_v56 = vadd.f32 %v1467_v53, %v1426_v50  ;;  %v1530_v57 = vpack.c.bf16 %v1523_v55, %v1522_v54  ;;  %v1534_v12 = vadd.f32 %v1526_v62, %v1522_v54 }
 0x370   : > { %v1505_v58 = vpop.f32.mrf.mxu0  ;;  %v2218_v59 = vpop.f32.mrf.mxu1 }
 0x371   : > { %1519 = vst.msk [vmem:[#allocation2 + $0x18] sm:$0xff] %vm650_vm1, %v1513_v56  ;;  %v1514_v60 = vsub.f32 %v1505_v58, %v1423_v45  ;;  %2227 = vmatprep.mubr.msk.bf16.mxu1 %vm650_vm1, %v1530_v57 }
 0x372   : > { %v2223_v61 = vpop.f32.mrf.mxu0  ;;  %v1527_v63 = vld [vmem:[#allocation3 + $0x8] sm:$0xff] }
 0x373   : > { %v1516_v1 = vadd.f32 %v1514_v60, %v1464_v48  ;;  %v1532_v2 = vpack.c.bf16 %v1527_v63, %v1526_v62  ;;  %v1535_v6 = vadd.f32 %v1527_v63, %v1523_v55 }
 0x374   : > { %v1508_v3 = vpop.f32.mrf.mxu0  ;;  %v1524_v8 = vld [vmem:[#allocation2 + $0x10] sm:$0xff] }
 0x375   : > { %1520 = vst.msk [vmem:[#allocation3 + $0x10] sm:$0xff] %vm650_vm1, %v1516_v1  ;;  %v1515_v4 = vsub.f32 %v1508_v3, %v1426_v50  ;;  %2233 = vmatprep.mubr.msk.bf16.mxu0 %vm650_vm1, %v1532_v2  ;;  %v1538_v14 = vpack.c.bf16 %v1535_v6, %v1534_v12 }
 0x376   : > { %v2224_v5 = vpop.f32.mrf.mxu0 }
 0x377   : > { %v1517_v7 = vadd.f32 %v1515_v4, %v1467_v53 }
 0x378   : > { %v1525_v11 = vld [vmem:[#allocation2 + $0x18] sm:$0xff] }
 0x379   : > { %1521 = vst.msk [vmem:[#allocation3 + $0x18] sm:$0xff] %vm650_vm1, %v1517_v7  ;;  %v1531_v13 = vpack.c.bf16 %v1525_v11, %v1524_v8 }
 0x37b   : > { %2228 = vmatmul.mubr.msk.bf16.vlgmr.msra.gmra.mxu1 %vm650_vm1, %v1531_v13 }
 0x37c   : > { %2239 = vmatprep.mubr.msk.bf16.mxu1 %vm650_vm1, %v1538_v14  ;;  %2238 = vmatpush3.bf16.msra.mxu1 %v2384_v32  ;;  %v1528_v15 = vld [vmem:[#allocation3 + $0x10] sm:$0xff] }
 0x37d   : > { %v1536_v18 = vadd.f32 %v1528_v15, %v1524_v8 }
 0x380   : > { %v1529_v16 = vld [vmem:[#allocation3 + $0x18] sm:$0xff] }
 0x381   : > { %v1533_v17 = vpack.c.bf16 %v1529_v16, %v1528_v15  ;;  %v1537_v19 = vadd.f32 %v1529_v16, %v1525_v11 }
 0x383   : > { %2234 = vmatmul.mubr.msk.bf16.vlgmr.msra.gmra.mxu0 %vm650_vm1, %v1533_v17  ;;  %v1539_v20 = vpack.c.bf16 %v1537_v19, %v1536_v18 }
 0x385   : > { %2240 = vmatmul.mubr.msk.bf16.vlgmr.msra.gmra.mxu1 %vm650_vm1, %v1539_v20 }
 0x386   : > { %2638 = shalt.err (!%p2635_p8)
}
 0x387   : > { %s2639_s29 = scalar_lea.hbm %s3284_s30, 1024  ;;  %s2643_s15 = scalar_lea.hbm %s3387_s12, 2048 }
 0x388   : > { %p2640_p12 = scmp.ne.s32.totalorder %s3284_s30, %s2639_s29  ;;  %p2644_p2 = scmp.lt.s32.totalorder %s3284_s30, %s3387_s12 }
 0x389   : > { %p2645_p10 = scmp.lt.s32.totalorder %s2643_s15, %s2639_s29 }
 0x38a   : > { %p2641_p9 = pnand %p2640_p12, %p3450_p1 }
 0x38b   : > { %p2646_p4 = por %p2645_p10, %p2644_p2 }
 0x38c   : > { %p2642_p0 = pneg %p2641_p9 }
 0x38e   : > { %p2647_p13 = pnand %p2646_p4, %p2642_p0 }
 0x390   : > { %2650 = shalt.err (!%p2647_p13)
}
 0x391   : > { %s2753_s3 = smov 128   ;;  %s2754_s19 = smov 8  }
 0x392   : > { %2274 = dma.vmem_to_hbm [thread:$0]  (%p3450_p1), %s3287_s0, 1024, %s3284_s30, %s1740_s11, %s2753_s3, %s2753_s3, %s2754_s19  }
 0x393   : > { %s602_s14 = scalar_lea.vmem [#allocation19], %s3101_s18  ;;  %s3451_s0 = sld [smem:[#allocation39_spill]] }
 0x394   : > { %s1754_s18 = sshll.u32 %s602_s14, 4  ;;  %s1735_s26 = scalar_lea.sflag [#allocation6], %s3089_s21  ;;  %s3330_s18 = int_to_ptr.vmem [resolvable:$true] %s1754_s18 }
 0x395   : > { %s2651_s13 = scalar_lea.vmem %s3330_s18, 1024  ;;  %s2755_s23 = smov [#allocation19]  }
 0x396   : > { %p2652_p3 = scmp.ne.s32.totalorder %s3330_s18, %s2651_s13  ;;  %s2655_s27 = sshll.u32 %s2755_s23, 4  ;;  %s2656_s27 = int_to_ptr.vmem [resolvable:$false] %s2655_s27 }
 0x397   : > { %s2657_s28 = scalar_lea.vmem %s2656_s27, 2048  ;;  %p2658_p7 = scmp.lt.s32.totalorder %s3330_s18, %s2656_s27 }
 0x398   : > { %p2653_p5 = pnand %p2652_p3, %p3450_p1  ;;  %p2659_p11 = scmp.lt.s32.totalorder %s2657_s28, %s2651_s13 }
 0x399   : > { %s3328_s11 = scalar_lea.hbm %s3451_s0, %s2090_s25 }
 0x39a   : > { %p2654_p6 = pneg %p2653_p5  ;;  %p2660_p8 = por %p2659_p11, %p2658_p7 }
 0x39c   : > { %p2661_p12 = pnand %p2660_p8, %p2654_p6 }
 0x43b   : > { %v2229_v21 = vpop.f32.mrf.mxu1 }
 0x43d   : > { %v1580_v24 = vpop.f32.mrf.mxu1 }
 0x43f   : > { %v2230_v25 = vpop.f32.mrf.mxu1 }
 0x441   : > { %v1583_v26 = vpop.f32.mrf.mxu1 }
 0x443   : > { %v2235_v27 = vpop.f32.mrf.mxu0 }
 0x444   : > { %v1713_v28 = vadd.f32 %v2235_v27, %v2229_v21 }
 0x445   : > { %v1635_v29 = vpop.f32.mrf.mxu0  ;;  %v2241_v30 = vpop.f32.mrf.mxu1 }
 0x446   : > { %2069 = vst.msk [vmem:[%s602_s14 + $0x20] sm:$0xff] %vm650_vm1, %v1713_v28  ;;  %v1711_v31 = vadd.f32 %v1635_v29, %v1580_v24  ;;  %v1717_v32 = vsub.f32 %v2241_v30, %v2229_v21 }
 0x447   : > { %v2236_v33 = vpop.f32.mrf.mxu0  ;;  %v1696_v34 = vpop.f32.mrf.mxu1 }
 0x448   : > { %1723 = vst.msk [vmem:[%s602_s14] sm:$0xff] %vm650_vm1, %v1711_v31  ;;  %v1721_v9 = vadd.f32 %v2235_v27, %v1717_v32  ;;  %v1714_v35 = vadd.f32 %v2236_v33, %v2230_v25  ;;  %v1715_v36 = vsub.f32 %v1696_v34, %v1580_v24 }
 0x449   : > { %v1638_v37 = vpop.f32.mrf.mxu0  ;;  %v2242_v0 = vpop.f32.mrf.mxu1 }
 0x44a   : > { %2071 = vst.msk [vmem:[%s602_s14 + $0x30] sm:$0xff] %vm650_vm1, %v1721_v9  ;;  %2070 = vst.msk [vmem:[%s602_s14 + $0x28] sm:$0xff] %vm650_vm1, %v1714_v35  ;;  %v1719_v38 = vadd.f32 %v1715_v36, %v1635_v29  ;;  %v1712_v10 = vadd.f32 %v1638_v37, %v1583_v26  ;;  %v1718_v39 = vsub.f32 %v2242_v0, %v2230_v25 }
 0x44b   : > { %v1699_v40 = vpop.f32.mrf.mxu1 }
 0x44c   : > { %2067 = vst.msk [vmem:[%s602_s14 + $0x10] sm:$0xff] %vm650_vm1, %v1719_v38  ;;  %1724 = vst.msk [vmem:[%s602_s14 + $0x8] sm:$0xff] %vm650_vm1, %v1712_v10  ;;  %v1722_v22 = vadd.f32 %v2236_v33, %v1718_v39  ;;  %v1716_v41 = vsub.f32 %v1699_v40, %v1583_v26 }
 0x44e   : > { %2072 = vst.msk [vmem:[%s602_s14 + $0x38] sm:$0xff] %vm650_vm1, %v1722_v22  ;;  %v1720_v42 = vadd.f32 %v1716_v41, %v1638_v37 }
 0x450   : > { %2068 = vst.msk [vmem:[%s602_s14 + $0x18] sm:$0xff] %vm650_vm1, %v1720_v42 }
 0x451   : > { %2664 = shalt.err (!%p2661_p12)
}
 0x452   : > { %s2665_s25 = scalar_lea.hbm %s3328_s11, 1024  ;;  %s2669_s17 = scalar_lea.hbm %s3451_s0, 2048 }
 0x453   : > { %p2666_p9 = scmp.ne.s32.totalorder %s3328_s11, %s2665_s25  ;;  %p2670_p10 = scmp.lt.s32.totalorder %s3328_s11, %s3451_s0 }
 0x454   : > { %p2671_p4 = scmp.lt.s32.totalorder %s2669_s17, %s2665_s25 }
 0x455   : > { %p2667_p0 = pnand %p2666_p9, %p3450_p1 }
 0x456   : > { %p2672_p13 = por %p2671_p4, %p2670_p10 }
 0x457   : > { %p2668_p2 = pneg %p2667_p0 }
 0x459   : > { %p2673_p3 = pnand %p2672_p13, %p2668_p2 }
 0x45b   : > { %2676 = shalt.err (!%p2673_p3)
}
 0x45c   : > { %2273 = dma.vmem_to_hbm [thread:$0]  (%p3450_p1), %s3330_s18, 1024, %s3328_s11, %s1735_s26, %s2753_s3, %s2753_s3, %s2754_s19  }
 0x45d PF: > { %s3452_s1 = sld [smem:[#allocation29_spill]]  ;;  %p3455_p6 = scmp.ge.s32.totalorder %s2735_s24, 2 }
 0x45e   : > { %s3453_s6 = sld [smem:[#allocation33_spill]] }
 0x463   : > { %s1786_s14 = sand.u32 1, %s3452_s1  }
 0x464   : > { %p3454_p5 = scmp.ne.s32.totalorder %s3453_s6, 0  ;;  %s1787_s16 = scalar_lea.sflag [#allocation6], %s1786_s14 }
 0x466   : > { %p2307_p7 = pnand %p3455_p6, %p3454_p5 }
 0x468   : > { %p2308_p11 = pneg %p2307_p7 }
 0x46a   : > { %2714 = dma.done.wait (%p2308_p11), %s1787_s16, 1024  }
 0x46b   : > { %2716 = vsyncadd (%p2308_p11), %s1787_s16, 4294966272  ;;  %s1796_s30 = scalar_lea.sflag [#allocation21], %s1786_s14 }
 0x46c   : > { %2718 = dma.done.wait (%p2308_p11), %s1796_s30, 1024  }
 0x46d   : > { %2720 = vsyncadd (%p2308_p11), %s1796_s30, 4294966272  ;;  %s3456_s24 = sld [smem:[#allocation31_spill]]  ;;  %s3459_s21 = smov %s2727_s22 }
 0x46e   : > { %s3457_s20 = sld [smem:[#allocation30_spill]] }
 0x46f   : > { %s3458_s23 = sld [smem:[#allocation32_spill]] }
 0x473   : > { %p35_p1 = scmp.ge.s32.totalorder %s3456_s24, 4  }
 0x474   : > { %s3460_s22 = smov %s3457_s20 }
 0x475   :  { %37 = sbr.rel (!%p35_p1) target bundleno = 19 (0x13), region = 187 }
 0x47a   :  { %1801 = vsyncpa [#allocation5], 1 }
 0x47b   :  { %1803 = vsyncpa [#allocation5 + $0x1], 1 }
 0x47c   :  { %1804 = vsyncpa [#allocation8], 1 }
 0x47d   :  { %1806 = vsyncpa [#allocation8 + $0x1], 1 }
 0x47e   :  { %1807 = vsyncpa [#allocation11], 1 }
 0x47f   :  { %1808 = vsyncpa [#allocation14], 1 }
 0x480   :  { %1809 = vsyncpa [#allocation17], 1 }
 0x481   :  { %1810 = vsyncpa [#allocation6], 1 }
 0x482   :  { %1812 = vsyncpa [#allocation6 + $0x1], 1 }
 0x483   :  { %1813 = vsyncpa [#allocation21], 1 }
 0x484   :  { %1815 = vsyncpa [#allocation21 + $0x1], 1 }

</bundles_post_ra>
